<compile_context>
chip_gen: v5e
topology: v5e:2x2
jax: 0.10.0
libtpu: 0.0.40
codegen_flags: <defaults>
</compile_context>

<pallas_src>
import functools
import math

import jax
import jax.numpy as jnp
from jax import lax
from jax.experimental import pallas as pl
from jax.experimental.pallas import tpu as pltpu


# ------------------------------ kernel helpers ------------------------------

def _rms(x, g, eps):
    var = jnp.mean(x * x, axis=-1, keepdims=True)
    return g * (x * lax.rsqrt(var + eps))


# --------------------------- fused whole-model kernel ------------------------

def _fused_kernel(x_ref, wqkv_ref, wo_ref, w13_ref, w2_ref,
                  attn_g_ref, ffn_g_ref, cos_ref, sin_ref, mask_ref,
                  norm_g_ref, wout_ref, o_ref, resid_ref, attn_ref,
                  *, n_heads, eps, scale):
    layer = pl.program_id(1)
    n_layers = pl.num_programs(1)
    seq, d = resid_ref.shape
    dh = d // n_heads

    # First layer step for this batch element: load its embedding rows into
    # the residual-stream scratch (VMEM-resident across all layers).
    @pl.when(layer == 0)
    def _():
        resid_ref[...] = x_ref[...]

    x = resid_ref[...]                                     # (S, D) f32

    # ------------------------------ attention ------------------------------
    xn = _rms(x, attn_g_ref[0], eps)
    qkv = jnp.dot(xn.astype(jnp.bfloat16), wqkv_ref[0],
                  preferred_element_type=jnp.float32)      # (S, 3D)
    q = qkv[:, :d]
    k = qkv[:, d:2 * d]
    v = qkv[:, 2 * d:]

    # Heads as a batch axis: (H, S, Dh).
    qh = jnp.stack([q[:, h * dh:(h + 1) * dh] for h in range(n_heads)])
    kh = jnp.stack([k[:, h * dh:(h + 1) * dh] for h in range(n_heads)])
    vh = jnp.stack([v[:, h * dh:(h + 1) * dh] for h in range(n_heads)])

    # RoPE, f32, applied once per layer to all heads at once.
    cos = cos_ref[...]                                     # (1, S, Dh)
    sin = sin_ref[...]
    half = dh // 2

    def _rope(t):
        t_rot = jnp.concatenate([-t[..., half:], t[..., :half]], axis=-1)
        return t * cos + t_rot * sin

    qh = _rope(qh)
    kh = _rope(kh)

    # One batched QK^T and ONE softmax over the whole (H, S, S) slab.
    sc = jnp.einsum("hqd,hkd->hqk", qh.astype(jnp.bfloat16),
                    kh.astype(jnp.bfloat16),
                    preferred_element_type=jnp.float32) * scale
    sc = sc + mask_ref[...]                                # additive key bias
    sc = sc - jnp.max(sc, axis=-1, keepdims=True)
    p = jnp.exp(sc)
    p = p * pl.reciprocal(jnp.sum(p, axis=-1, keepdims=True), approx=True)

    oh = jnp.einsum("hqk,hkd->hqd", p.astype(jnp.bfloat16),
                    vh.astype(jnp.bfloat16),
                    preferred_element_type=jnp.float32)    # (H, S, Dh)

    # Assemble the (S, D) attention output via slice stores into VMEM scratch
    # (no concatenate), then a single K=D o-projection matmul + residual add.
    for h in range(n_heads):
        attn_ref[:, h * dh:(h + 1) * dh] = oh[h].astype(jnp.bfloat16)
    x = x + jnp.dot(attn_ref[...], wo_ref[0],
                    preferred_element_type=jnp.float32)

    # ------------------------------- SwiGLU --------------------------------
    xn = _rms(x, ffn_g_ref[0], eps)
    h13 = jnp.dot(xn.astype(jnp.bfloat16), w13_ref[0],
                  preferred_element_type=jnp.float32)      # (S, 2F)
    f = h13.shape[-1] // 2
    h1 = h13[:, :f]
    h3 = h13[:, f:]
    g = (h1 * jax.nn.sigmoid(h1)) * h3                     # SiLU(w1 x) * (w3 x)
    x = x + jnp.dot(g.astype(jnp.bfloat16), w2_ref[0],
                    preferred_element_type=jnp.float32)

    resid_ref[...] = x

    # Last layer step: fused final RMSNorm + vocab projection.
    @pl.when(layer == n_layers - 1)
    def _():
        xn_f = _rms(x, norm_g_ref[...], eps)
        o_ref[...] = jnp.dot(xn_f.astype(jnp.bfloat16), wout_ref[...],
                             preferred_element_type=jnp.float32
                             ).astype(o_ref.dtype)


# ------------------------------- model glue ----------------------------------

def rope_cache(dh, seq_len):
    inv_freq = 1.0 / (10000.0 ** (jnp.arange(0, dh, 2, dtype=jnp.float32) / dh))
    t = jnp.arange(seq_len, dtype=jnp.float32)
    freqs = jnp.einsum("i,j->ij", t, inv_freq)
    emb = jnp.concatenate([freqs, freqs], axis=-1)          # (S, Dh)
    return jnp.cos(emb), jnp.sin(emb)


def init_params(key, vocab, dim, n_layers, ffn_dim):
    """Float32 parameters, same init as the PyTorch module (N(0, 0.02))."""
    std = 0.02
    keys = iter(jax.random.split(key, 2 + 7 * n_layers))
    p = {"emb": jax.random.normal(next(keys), (vocab + 1, dim), jnp.float32) * std,
         "norm": jnp.ones((dim,), jnp.float32),
         "wout": jax.random.normal(next(keys), (dim, vocab), jnp.float32) * std,
         "layers": []}
    for _ in range(n_layers):
        p["layers"].append({
            "wq": jax.random.normal(next(keys), (dim, dim), jnp.float32) * std,
            "wk": jax.random.normal(next(keys), (dim, dim), jnp.float32) * std,
            "wv": jax.random.normal(next(keys), (dim, dim), jnp.float32) * std,
            "wo": jax.random.normal(next(keys), (dim, dim), jnp.float32) * std,
            "w1": jax.random.normal(next(keys), (dim, ffn_dim), jnp.float32) * std,
            "w3": jax.random.normal(next(keys), (dim, ffn_dim), jnp.float32) * std,
            "w2": jax.random.normal(next(keys), (ffn_dim, dim), jnp.float32) * std,
            "attn_norm": jnp.ones((dim,), jnp.float32),
            "ffn_norm": jnp.ones((dim,), jnp.float32),
        })
    return p


def pack_params(p):
    """Merge QKV / W1-W3, stack per-layer weights with a leading L axis and
    cast matmul weights to bf16 for the MXU."""
    layers = p["layers"]
    return {
        "emb": p["emb"],
        "norm": p["norm"],
        "wout": p["wout"].astype(jnp.bfloat16),
        "wqkv": jnp.stack([jnp.concatenate([lp["wq"], lp["wk"], lp["wv"]], axis=1)
                           for lp in layers]).astype(jnp.bfloat16),     # (L, D, 3D)
        "wo": jnp.stack([lp["wo"] for lp in layers]).astype(jnp.bfloat16),
        "w13": jnp.stack([jnp.concatenate([lp["w1"], lp["w3"]], axis=1)
                          for lp in layers]).astype(jnp.bfloat16),      # (L, D, 2F)
        "w2": jnp.stack([lp["w2"] for lp in layers]).astype(jnp.bfloat16),
        "attn_norm": jnp.stack([lp["attn_norm"] for lp in layers])[:, None, :],
        "ffn_norm": jnp.stack([lp["ffn_norm"] for lp in layers])[:, None, :],
    }


def mask_predictor_forward(params, input_ids, n_heads, attention_mask=None,
                           eps=1e-6):
    b, s = input_ids.shape
    emb = params["emb"]
    d = emb.shape[1]
    dh = d // n_heads
    n_layers = params["wqkv"].shape[0]
    two_f = params["w13"].shape[-1]
    f = two_f // 2
    vocab = params["wout"].shape[-1]
    scale = 1.0 / math.sqrt(dh)

    cos, sin = rope_cache(dh, s)
    cos = cos.reshape(1, s, dh)
    sin = sin.reshape(1, s, dh)

    if attention_mask is None:
        mask = jnp.zeros((b, 1, s), jnp.float32)
    else:
        # Padding masks broadcastable from (B,1,1,S) only.
        mask = attention_mask.astype(jnp.float32).reshape(b, 1, s)

    x2d = emb[input_ids].reshape(b * s, d)       # token gather stays in XLA

    kernel = functools.partial(_fused_kernel, n_heads=n_heads, eps=eps,
                               scale=scale)

    logits2d = pl.pallas_call(
        kernel,
        out_shape=jax.ShapeDtypeStruct((b * s, vocab), jnp.float32),
        grid=(b, n_layers),
        in_specs=[
            pl.BlockSpec((s, d), lambda bb, l: (bb, 0)),            # emb rows
            pl.BlockSpec((1, d, 3 * d), lambda bb, l: (l, 0, 0)),   # wqkv
            pl.BlockSpec((1, d, d), lambda bb, l: (l, 0, 0)),       # wo
            pl.BlockSpec((1, d, two_f), lambda bb, l: (l, 0, 0)),   # w13
            pl.BlockSpec((1, f, d), lambda bb, l: (l, 0, 0)),       # w2
            pl.BlockSpec((1, 1, d), lambda bb, l: (l, 0, 0)),       # attn norm g
            pl.BlockSpec((1, 1, d), lambda bb, l: (l, 0, 0)),       # ffn norm g
            pl.BlockSpec((1, s, dh), lambda bb, l: (0, 0, 0)),      # cos (const)
            pl.BlockSpec((1, s, dh), lambda bb, l: (0, 0, 0)),      # sin (const)
            pl.BlockSpec((1, 1, s), lambda bb, l: (bb, 0, 0)),      # key bias
            pl.BlockSpec((1, d), lambda bb, l: (0, 0)),             # final norm g
            pl.BlockSpec((d, vocab), lambda bb, l: (0, 0)),         # wout (const)
        ],
        out_specs=pl.BlockSpec((s, vocab), lambda bb, l: (bb, 0)),
        scratch_shapes=[pltpu.VMEM((s, d), jnp.float32),      # residual stream
                        pltpu.VMEM((s, d), jnp.bfloat16)],    # attn output
        compiler_params=pltpu.CompilerParams(
            dimension_semantics=("parallel", "arbitrary"),
            vmem_limit_bytes=32 * 1024 * 1024),
    )(x2d, params["wqkv"], params["wo"], params["w13"], params["w2"],
      params["attn_norm"], params["ffn_norm"], cos, sin, mask,
      params["norm"].reshape(1, d), params["wout"])

    return logits2d.reshape(b, s, vocab)


# ------------------------- pure-JAX f32 reference ----------------------------

def _forward_reference(params, input_ids, n_heads, attention_mask=None, eps=1e-6):
    x = params["emb"][input_ids]
    b, s, d = x.shape
    dh = d // n_heads
    cos, sin = rope_cache(dh, s)

    def rms(y, w):
        var = jnp.mean(y * y, axis=-1, keepdims=True)
        return w * (y * lax.rsqrt(var + eps))

    def rot_half(y):
        y1, y2 = y[..., : dh // 2], y[..., dh // 2:]
        return jnp.concatenate([-y2, y1], axis=-1)

    for lp in params["layers"]:
        h = rms(x, lp["attn_norm"])
        q = (h @ lp["wq"]).reshape(b, s, n_heads, dh).transpose(0, 2, 1, 3)
        k = (h @ lp["wk"]).reshape(b, s, n_heads, dh).transpose(0, 2, 1, 3)
        v = (h @ lp["wv"]).reshape(b, s, n_heads, dh).transpose(0, 2, 1, 3)
        q = q * cos + rot_half(q) * sin
        k = k * cos + rot_half(k) * sin
        sc = jnp.einsum("bhqd,bhkd->bhqk", q, k) / math.sqrt(dh)
        if attention_mask is not None:
            sc = sc + attention_mask
        p = jax.nn.softmax(sc, axis=-1)
        o = jnp.einsum("bhqk,bhkd->bhqd", p, v).transpose(0, 2, 1, 3).reshape(b, s, d)
        x = x + o @ lp["wo"]
        h = rms(x, lp["ffn_norm"])
        x = x + (jax.nn.silu(h @ lp["w1"]) * (h @ lp["w3"])) @ lp["w2"]
    x = rms(x, params["norm"])
    return x @ params["wout"]


# ----------------------------------- main ------------------------------------

if __name__ == "__main__":
    VOCAB = 128      # lane-dense vocab (multiple of 128)
    DIM = 128        # lane-dense model dim
    N_LAYERS = 2
    N_HEADS = 2      # head_dim = 64
    FFN_DIM = 256
    SEQ = 16
    BATCH = 2

    key = jax.random.PRNGKey(0)
    pkey, dkey = jax.random.split(key)

    params_f32 = init_params(pkey, VOCAB, DIM, N_LAYERS, FFN_DIM)
    params = pack_params(params_f32)

    # token ids in [0, VOCAB]; id == VOCAB is the mask token (row VOCAB of emb)
    input_ids = jax.random.randint(dkey, (BATCH, SEQ), 0, VOCAB + 1,
                                   dtype=jnp.int32)

    # --- no attention mask ---
    logits = mask_predictor_forward(params, input_ids, N_HEADS,
                                    attention_mask=None)
    logits = jax.block_until_ready(logits)
    assert logits.shape == (BATCH, SEQ, VOCAB)
    assert bool(jnp.all(jnp.isfinite(logits)))

    ref = _forward_reference(params_f32, input_ids, N_HEADS, attention_mask=None)
    max_err = float(jnp.max(jnp.abs(logits - ref)))
    assert max_err < 5e-2, f"mismatch vs reference (no mask): {max_err}"

    # --- with a (B,1,1,S) padding mask (mask last 3 keys of batch 1) ---
    am = jnp.zeros((BATCH, 1, 1, SEQ), jnp.float32).at[1, 0, 0, SEQ - 3:].set(-1e9)
    logits_m = jax.block_until_ready(
        mask_predictor_forward(params, input_ids, N_HEADS, attention_mask=am))
    ref_m = _forward_reference(params_f32, input_ids, N_HEADS, attention_mask=am)
    max_err_m = float(jnp.max(jnp.abs(logits_m - ref_m)))
    assert max_err_m < 5e-2, f"mismatch vs reference (mask): {max_err_m}"

    print("KERNEL_OK")
</pallas_src>

<mosaic_0001>
module attributes {stable_mosaic.version = 11 : i64} {
  func.func @_fused_kernel(%arg0: i32, %arg1: i32, %arg2: memref<16x128xf32, #tpu.memory_space<vmem>>, %arg3: memref<1x128x384xbf16, #tpu.memory_space<vmem>>, %arg4: memref<1x128x128xbf16, #tpu.memory_space<vmem>>, %arg5: memref<1x128x512xbf16, #tpu.memory_space<vmem>>, %arg6: memref<1x256x128xbf16, #tpu.memory_space<vmem>>, %arg7: memref<1x1x128xf32, #tpu.memory_space<vmem>>, %arg8: memref<1x1x128xf32, #tpu.memory_space<vmem>>, %arg9: memref<1x16x64xf32, #tpu.memory_space<vmem>>, %arg10: memref<1x16x64xf32, #tpu.memory_space<vmem>>, %arg11: memref<1x1x16xf32, #tpu.memory_space<vmem>>, %arg12: memref<1x128xf32, #tpu.memory_space<vmem>>, %arg13: memref<128x128xbf16, #tpu.memory_space<vmem>>, %arg14: memref<16x128xf32, #tpu.memory_space<vmem>>, %arg15: memref<16x128xf32, #tpu.memory_space<vmem>>, %arg16: memref<16x128xbf16, #tpu.memory_space<vmem>>) attributes {dimension_semantics = [#tpu.dimension_semantics<parallel>, #tpu.dimension_semantics<arbitrary>], iteration_bounds = array<i64: 2, 2>, scalar_prefetch = 0 : i64, scratch_operands = 2 : i64, tpu.core_type = #tpu.core_type<tc>, window_params = [{transform_indices = @transform_0, window_bounds = array<i64: 16, 128>}, {transform_indices = @transform_1, window_bounds = array<i64: 1, 128, 384>}, {transform_indices = @transform_2, window_bounds = array<i64: 1, 128, 128>}, {transform_indices = @transform_3, window_bounds = array<i64: 1, 128, 512>}, {transform_indices = @transform_4, window_bounds = array<i64: 1, 256, 128>}, {transform_indices = @transform_5, window_bounds = array<i64: 1, 1, 128>}, {transform_indices = @transform_6, window_bounds = array<i64: 1, 1, 128>}, {pipeline_mode = #tpu.pipeline_mode<synchronous>, transform_indices = @transform_7, window_bounds = array<i64: 1, 16, 64>}, {pipeline_mode = #tpu.pipeline_mode<synchronous>, transform_indices = @transform_8, window_bounds = array<i64: 1, 16, 64>}, {transform_indices = @transform_9, window_bounds = array<i64: 1, 1, 16>}, {pipeline_mode = #tpu.pipeline_mode<synchronous>, transform_indices = @transform_10, window_bounds = array<i64: 1, 128>}, {pipeline_mode = #tpu.pipeline_mode<synchronous>, transform_indices = @transform_11, window_bounds = array<i64: 128, 128>}, {transform_indices = @transform_12, window_bounds = array<i64: 16, 128>}]} {
    %c0_i32 = arith.constant 0 : i32
    %0 = arith.cmpi eq, %arg1, %c0_i32 : i32
    %1 = arith.extui %0 : i1 to i32
    %c0_i32_0 = arith.constant 0 : i32
    %2 = arith.cmpi ne, %1, %c0_i32_0 : i32
    scf.if %2 {
      %c0_54 = arith.constant 0 : index
      %c0_55 = arith.constant 0 : index
      %132 = vector.load %arg2[%c0_54, %c0_55] : memref<16x128xf32, #tpu.memory_space<vmem>>, vector<16x128xf32>
      %c0_56 = arith.constant 0 : index
      %c0_57 = arith.constant 0 : index
      %133 = vector.load %arg15[%c0_56, %c0_57] : memref<16x128xf32, #tpu.memory_space<vmem>>, vector<16x128xf32>
      tpu.vector_store %arg15[%c0_56, %c0_57], %132 {strides = array<i32>} : memref<16x128xf32, #tpu.memory_space<vmem>>, vector<16x128xf32>,
    } else {
    }
    %c0 = arith.constant 0 : index
    %c0_1 = arith.constant 0 : index
    %3 = vector.load %arg15[%c0, %c0_1] : memref<16x128xf32, #tpu.memory_space<vmem>>, vector<16x128xf32>
    %c0_2 = arith.constant 0 : index
    %c0_3 = arith.constant 0 : index
    %c0_4 = arith.constant 0 : index
    %4 = vector.load %arg7[%c0_2, %c0_3, %c0_4] : memref<1x1x128xf32, #tpu.memory_space<vmem>>, vector<1x1x128xf32>
    %5 = vector.shape_cast %4 : vector<1x1x128xf32> to vector<1x128xf32>
    %6 = arith.mulf %3, %3 : vector<16x128xf32>
    %cst = arith.constant dense<0.000000e+00> : vector<16xf32>
    %7 = vector.multi_reduction <add>, %6, %cst [1] : vector<16x128xf32> to vector<16xf32>
    %8 = vector.shape_cast %7 : vector<16xf32> to vector<16x1xf32>
    %cst_5 = arith.constant 1.280000e+02 : f32
    %9 = vector.broadcast %cst_5 : f32 to vector<16x1xf32>
    %10 = arith.divf %8, %9 : vector<16x1xf32>
    %cst_6 = arith.constant 9.99999997E-7 : f32
    %11 = vector.broadcast %cst_6 : f32 to vector<16x1xf32>
    %12 = arith.addf %10, %11 : vector<16x1xf32>
    %13 = math.rsqrt %12 : vector<16x1xf32>
    %14 = vector.broadcast %13 : vector<16x1xf32> to vector<16x128xf32>
    %15 = arith.mulf %3, %14 : vector<16x128xf32>
    %16 = vector.broadcast %5 : vector<1x128xf32> to vector<16x128xf32>
    %17 = arith.mulf %16, %15 : vector<16x128xf32>
    %18 = arith.truncf %17 : vector<16x128xf32> to vector<16x128xbf16>
    %c0_7 = arith.constant 0 : index
    %c0_8 = arith.constant 0 : index
    %c0_9 = arith.constant 0 : index
    %19 = vector.load %arg3[%c0_7, %c0_8, %c0_9] : memref<1x128x384xbf16, #tpu.memory_space<vmem>>, vector<1x128x384xbf16>
    %20 = vector.shape_cast %19 : vector<1x128x384xbf16> to vector<128x384xbf16>
    %cst_10 = arith.constant dense<0.000000e+00> : vector<16x384xf32>
    %21 = tpu.matmul %18, %20, %cst_10 {dimension_numbers = #tpu.dot_dimension_numbers<[1], [0], [0], [1], [0, 0, 1, 1], [], []>} : vector<16x128xbf16>, vector<128x384xbf16>, vector<16x384xf32> -> vector<16x384xf32>
    %22 = vector.extract_strided_slice %21 {offsets = [0, 0], sizes = [16, 128], strides = [1, 1]} : vector<16x384xf32> to vector<16x128xf32>
    %23 = vector.extract_strided_slice %21 {offsets = [0, 128], sizes = [16, 128], strides = [1, 1]} : vector<16x384xf32> to vector<16x128xf32>
    %24 = vector.extract_strided_slice %21 {offsets = [0, 256], sizes = [16, 128], strides = [1, 1]} : vector<16x384xf32> to vector<16x128xf32>
    %25 = vector.extract_strided_slice %22 {offsets = [0, 0], sizes = [16, 64], strides = [1, 1]} : vector<16x128xf32> to vector<16x64xf32>
    %26 = vector.extract_strided_slice %22 {offsets = [0, 64], sizes = [16, 64], strides = [1, 1]} : vector<16x128xf32> to vector<16x64xf32>
    %27 = vector.shape_cast %25 : vector<16x64xf32> to vector<1x16x64xf32>
    %28 = vector.shape_cast %26 : vector<16x64xf32> to vector<1x16x64xf32>
    %29 = tpu.concatenate %27, %28 in 0 : vector<1x16x64xf32>, vector<1x16x64xf32> -> vector<2x16x64xf32>
    %30 = vector.extract_strided_slice %23 {offsets = [0, 0], sizes = [16, 64], strides = [1, 1]} : vector<16x128xf32> to vector<16x64xf32>
    %31 = vector.extract_strided_slice %23 {offsets = [0, 64], sizes = [16, 64], strides = [1, 1]} : vector<16x128xf32> to vector<16x64xf32>
    %32 = vector.shape_cast %30 : vector<16x64xf32> to vector<1x16x64xf32>
    %33 = vector.shape_cast %31 : vector<16x64xf32> to vector<1x16x64xf32>
    %34 = tpu.concatenate %32, %33 in 0 : vector<1x16x64xf32>, vector<1x16x64xf32> -> vector<2x16x64xf32>
    %35 = vector.extract_strided_slice %24 {offsets = [0, 0], sizes = [16, 64], strides = [1, 1]} : vector<16x128xf32> to vector<16x64xf32>
    %36 = vector.extract_strided_slice %24 {offsets = [0, 64], sizes = [16, 64], strides = [1, 1]} : vector<16x128xf32> to vector<16x64xf32>
    %37 = vector.shape_cast %35 : vector<16x64xf32> to vector<1x16x64xf32>
    %38 = vector.shape_cast %36 : vector<16x64xf32> to vector<1x16x64xf32>
    %39 = tpu.concatenate %37, %38 in 0 : vector<1x16x64xf32>, vector<1x16x64xf32> -> vector<2x16x64xf32>
    %c0_11 = arith.constant 0 : index
    %c0_12 = arith.constant 0 : index
    %c0_13 = arith.constant 0 : index
    %40 = vector.load %arg9[%c0_11, %c0_12, %c0_13] : memref<1x16x64xf32, #tpu.memory_space<vmem>>, vector<1x16x64xf32>
    %c0_14 = arith.constant 0 : index
    %c0_15 = arith.constant 0 : index
    %c0_16 = arith.constant 0 : index
    %41 = vector.load %arg10[%c0_14, %c0_15, %c0_16] : memref<1x16x64xf32, #tpu.memory_space<vmem>>, vector<1x16x64xf32>
    %42 = vector.extract_strided_slice %29 {offsets = [0, 0, 32], sizes = [2, 16, 32], strides = [1, 1, 1]} : vector<2x16x64xf32> to vector<2x16x32xf32>
    %cst_17 = arith.constant 0.000000e+00 : f32
    %43 = vector.broadcast %cst_17 : f32 to vector<2x16x32xf32>
    %44 = arith.subf %43, %42 : vector<2x16x32xf32>
    %45 = vector.extract_strided_slice %29 {offsets = [0, 0, 0], sizes = [2, 16, 32], strides = [1, 1, 1]} : vector<2x16x64xf32> to vector<2x16x32xf32>
    %46 = tpu.concatenate %44, %45 in 2 : vector<2x16x32xf32>, vector<2x16x32xf32> -> vector<2x16x64xf32>
    %47 = vector.broadcast %40 : vector<1x16x64xf32> to vector<2x16x64xf32>
    %48 = arith.mulf %29, %47 : vector<2x16x64xf32>
    %49 = vector.broadcast %41 : vector<1x16x64xf32> to vector<2x16x64xf32>
    %50 = arith.mulf %46, %49 : vector<2x16x64xf32>
    %51 = arith.addf %48, %50 : vector<2x16x64xf32>
    %52 = vector.extract_strided_slice %34 {offsets = [0, 0, 32], sizes = [2, 16, 32], strides = [1, 1, 1]} : vector<2x16x64xf32> to vector<2x16x32xf32>
    %cst_18 = arith.constant 0.000000e+00 : f32
    %53 = vector.broadcast %cst_18 : f32 to vector<2x16x32xf32>
    %54 = arith.subf %53, %52 : vector<2x16x32xf32>
    %55 = vector.extract_strided_slice %34 {offsets = [0, 0, 0], sizes = [2, 16, 32], strides = [1, 1, 1]} : vector<2x16x64xf32> to vector<2x16x32xf32>
    %56 = tpu.concatenate %54, %55 in 2 : vector<2x16x32xf32>, vector<2x16x32xf32> -> vector<2x16x64xf32>
    %57 = vector.broadcast %40 : vector<1x16x64xf32> to vector<2x16x64xf32>
    %58 = arith.mulf %34, %57 : vector<2x16x64xf32>
    %59 = vector.broadcast %41 : vector<1x16x64xf32> to vector<2x16x64xf32>
    %60 = arith.mulf %56, %59 : vector<2x16x64xf32>
    %61 = arith.addf %58, %60 : vector<2x16x64xf32>
    %62 = arith.truncf %51 : vector<2x16x64xf32> to vector<2x16x64xbf16>
    %63 = arith.truncf %61 : vector<2x16x64xf32> to vector<2x16x64xbf16>
    "tpu.trace_start"() <{level = 10 : i32, message = "hqd,hkd->hqk"}> : () -> ()
    %cst_19 = arith.constant dense<0.000000e+00> : vector<2x16x16xf32>
    %64 = tpu.matmul %62, %63, %cst_19 {dimension_numbers = #tpu.dot_dimension_numbers<[2], [2], [1], [1], [0, 0, 0, 1, 1, 1], [0], [0]>} : vector<2x16x64xbf16>, vector<2x16x64xbf16>, vector<2x16x16xf32> -> vector<2x16x16xf32>
    "tpu.trace_stop"() : () -> ()
    %cst_20 = arith.constant 1.250000e-01 : f32
    %65 = vector.broadcast %cst_20 : f32 to vector<2x16x16xf32>
    %66 = arith.mulf %64, %65 : vector<2x16x16xf32>
    %c0_21 = arith.constant 0 : index
    %c0_22 = arith.constant 0 : index
    %c0_23 = arith.constant 0 : index
    %67 = vector.load %arg11[%c0_21, %c0_22, %c0_23] : memref<1x1x16xf32, #tpu.memory_space<vmem>>, vector<1x1x16xf32>
    %68 = vector.broadcast %67 : vector<1x1x16xf32> to vector<2x16x16xf32>
    %69 = arith.addf %66, %68 : vector<2x16x16xf32>
    %cst_24 = arith.constant dense<0xFF800000> : vector<2x16xf32>
    %70 = vector.multi_reduction <maximumf>, %69, %cst_24 [2] : vector<2x16x16xf32> to vector<2x16xf32>
    %71 = vector.shape_cast %70 : vector<2x16xf32> to vector<2x16x1xf32>
    %72 = vector.broadcast %71 : vector<2x16x1xf32> to vector<2x16x16xf32>
    %73 = arith.subf %69, %72 : vector<2x16x16xf32>
    %74 = math.exp %73 : vector<2x16x16xf32>
    %cst_25 = arith.constant dense<0.000000e+00> : vector<2x16xf32>
    %75 = vector.multi_reduction <add>, %74, %cst_25 [2] : vector<2x16x16xf32> to vector<2x16xf32>
    %76 = vector.shape_cast %75 : vector<2x16xf32> to vector<2x16x1xf32>
    %77 = tpu.reciprocal %76 {approx = true} : vector<2x16x1xf32> -> vector<2x16x1xf32>
    %78 = vector.broadcast %77 : vector<2x16x1xf32> to vector<2x16x16xf32>
    %79 = arith.mulf %74, %78 : vector<2x16x16xf32>
    %80 = arith.truncf %79 : vector<2x16x16xf32> to vector<2x16x16xbf16>
    %81 = arith.truncf %39 : vector<2x16x64xf32> to vector<2x16x64xbf16>
    "tpu.trace_start"() <{level = 10 : i32, message = "hqk,hkd->hqd"}> : () -> ()
    %cst_26 = arith.constant dense<0.000000e+00> : vector<2x16x64xf32>
    %82 = tpu.matmul %80, %81, %cst_26 {dimension_numbers = #tpu.dot_dimension_numbers<[2], [1], [1], [2], [0, 0, 0, 1, 1, 2], [0], [0]>} : vector<2x16x16xbf16>, vector<2x16x64xbf16>, vector<2x16x64xf32> -> vector<2x16x64xf32>
    "tpu.trace_stop"() : () -> ()
    %83 = vector.extract_strided_slice %82 {offsets = [0, 0, 0], sizes = [1, 16, 64], strides = [1, 1, 1]} : vector<2x16x64xf32> to vector<1x16x64xf32>
    %84 = vector.shape_cast %83 : vector<1x16x64xf32> to vector<16x64xf32>
    %85 = arith.truncf %84 : vector<16x64xf32> to vector<16x64xbf16>
    %c0_27 = arith.constant 0 : index
    %c0_28 = arith.constant 0 : index
    %86 = vector.load %arg16[%c0_27, %c0_28] : memref<16x128xbf16, #tpu.memory_space<vmem>>, vector<16x64xbf16>
    tpu.vector_store %arg16[%c0_27, %c0_28], %85 {strides = array<i32>} : memref<16x128xbf16, #tpu.memory_space<vmem>>, vector<16x64xbf16>,
    %87 = vector.extract_strided_slice %82 {offsets = [1, 0, 0], sizes = [1, 16, 64], strides = [1, 1, 1]} : vector<2x16x64xf32> to vector<1x16x64xf32>
    %88 = vector.shape_cast %87 : vector<1x16x64xf32> to vector<16x64xf32>
    %89 = arith.truncf %88 : vector<16x64xf32> to vector<16x64xbf16>
    %c0_29 = arith.constant 0 : index
    %c64 = arith.constant 64 : index
    %90 = vector.load %arg16[%c0_29, %c64] : memref<16x128xbf16, #tpu.memory_space<vmem>>, vector<16x64xbf16>
    tpu.vector_store %arg16[%c0_29, %c64], %89 {strides = array<i32>} : memref<16x128xbf16, #tpu.memory_space<vmem>>, vector<16x64xbf16>,
    %c0_30 = arith.constant 0 : index
    %c0_31 = arith.constant 0 : index
    %91 = vector.load %arg16[%c0_30, %c0_31] : memref<16x128xbf16, #tpu.memory_space<vmem>>, vector<16x128xbf16>
    %c0_32 = arith.constant 0 : index
    %c0_33 = arith.constant 0 : index
    %c0_34 = arith.constant 0 : index
    %92 = vector.load %arg4[%c0_32, %c0_33, %c0_34] : memref<1x128x128xbf16, #tpu.memory_space<vmem>>, vector<1x128x128xbf16>
    %93 = vector.shape_cast %92 : vector<1x128x128xbf16> to vector<128x128xbf16>
    %cst_35 = arith.constant dense<0.000000e+00> : vector<16x128xf32>
    %94 = tpu.matmul %91, %93, %cst_35 {dimension_numbers = #tpu.dot_dimension_numbers<[1], [0], [0], [1], [0, 0, 1, 1], [], []>} : vector<16x128xbf16>, vector<128x128xbf16>, vector<16x128xf32> -> vector<16x128xf32>
    %95 = arith.addf %3, %94 : vector<16x128xf32>
    %c0_36 = arith.constant 0 : index
    %c0_37 = arith.constant 0 : index
    %c0_38 = arith.constant 0 : index
    %96 = vector.load %arg8[%c0_36, %c0_37, %c0_38] : memref<1x1x128xf32, #tpu.memory_space<vmem>>, vector<1x1x128xf32>
    %97 = vector.shape_cast %96 : vector<1x1x128xf32> to vector<1x128xf32>
    %98 = arith.mulf %95, %95 : vector<16x128xf32>
    %cst_39 = arith.constant dense<0.000000e+00> : vector<16xf32>
    %99 = vector.multi_reduction <add>, %98, %cst_39 [1] : vector<16x128xf32> to vector<16xf32>
    %100 = vector.shape_cast %99 : vector<16xf32> to vector<16x1xf32>
    %cst_40 = arith.constant 1.280000e+02 : f32
    %101 = vector.broadcast %cst_40 : f32 to vector<16x1xf32>
    %102 = arith.divf %100, %101 : vector<16x1xf32>
    %cst_41 = arith.constant 9.99999997E-7 : f32
    %103 = vector.broadcast %cst_41 : f32 to vector<16x1xf32>
    %104 = arith.addf %102, %103 : vector<16x1xf32>
    %105 = math.rsqrt %104 : vector<16x1xf32>
    %106 = vector.broadcast %105 : vector<16x1xf32> to vector<16x128xf32>
    %107 = arith.mulf %95, %106 : vector<16x128xf32>
    %108 = vector.broadcast %97 : vector<1x128xf32> to vector<16x128xf32>
    %109 = arith.mulf %108, %107 : vector<16x128xf32>
    %110 = arith.truncf %109 : vector<16x128xf32> to vector<16x128xbf16>
    %c0_42 = arith.constant 0 : index
    %c0_43 = arith.constant 0 : index
    %c0_44 = arith.constant 0 : index
    %111 = vector.load %arg5[%c0_42, %c0_43, %c0_44] : memref<1x128x512xbf16, #tpu.memory_space<vmem>>, vector<1x128x512xbf16>
    %112 = vector.shape_cast %111 : vector<1x128x512xbf16> to vector<128x512xbf16>
    %cst_45 = arith.constant dense<0.000000e+00> : vector<16x512xf32>
    %113 = tpu.matmul %110, %112, %cst_45 {dimension_numbers = #tpu.dot_dimension_numbers<[1], [0], [0], [1], [0, 0, 1, 1], [], []>} : vector<16x128xbf16>, vector<128x512xbf16>, vector<16x512xf32> -> vector<16x512xf32>
    %114 = vector.extract_strided_slice %113 {offsets = [0, 0], sizes = [16, 256], strides = [1, 1]} : vector<16x512xf32> to vector<16x256xf32>
    %115 = vector.extract_strided_slice %113 {offsets = [0, 256], sizes = [16, 256], strides = [1, 1]} : vector<16x512xf32> to vector<16x256xf32>
    %116 = arith.negf %114 : vector<16x256xf32>
    %117 = math.exp %116 : vector<16x256xf32>
    %cst_46 = arith.constant 1.000000e+00 : f32
    %118 = vector.broadcast %cst_46 : f32 to vector<16x256xf32>
    %119 = arith.addf %118, %117 : vector<16x256xf32>
    %120 = arith.divf %118, %119 : vector<16x256xf32>
    %121 = arith.mulf %114, %120 : vector<16x256xf32>
    %122 = arith.mulf %121, %115 : vector<16x256xf32>
    %123 = arith.truncf %122 : vector<16x256xf32> to vector<16x256xbf16>
    %c0_47 = arith.constant 0 : index
    %c0_48 = arith.constant 0 : index
    %c0_49 = arith.constant 0 : index
    %124 = vector.load %arg6[%c0_47, %c0_48, %c0_49] : memref<1x256x128xbf16, #tpu.memory_space<vmem>>, vector<1x256x128xbf16>
    %125 = vector.shape_cast %124 : vector<1x256x128xbf16> to vector<256x128xbf16>
    %cst_50 = arith.constant dense<0.000000e+00> : vector<16x128xf32>
    %126 = tpu.matmul %123, %125, %cst_50 {dimension_numbers = #tpu.dot_dimension_numbers<[1], [0], [0], [1], [0, 0, 1, 1], [], []>} : vector<16x256xbf16>, vector<256x128xbf16>, vector<16x128xf32> -> vector<16x128xf32>
    %127 = arith.addf %95, %126 : vector<16x128xf32>
    %c0_51 = arith.constant 0 : index
    %c0_52 = arith.constant 0 : index
    %128 = vector.load %arg15[%c0_51, %c0_52] : memref<16x128xf32, #tpu.memory_space<vmem>>, vector<16x128xf32>
    tpu.vector_store %arg15[%c0_51, %c0_52], %127 {strides = array<i32>} : memref<16x128xf32, #tpu.memory_space<vmem>>, vector<16x128xf32>,
    %c1_i32 = arith.constant 1 : i32
    %129 = arith.cmpi eq, %arg1, %c1_i32 : i32
    %130 = arith.extui %129 : i1 to i32
    %c0_i32_53 = arith.constant 0 : i32
    %131 = arith.cmpi ne, %130, %c0_i32_53 : i32
    scf.if %131 {
      %c0_54 = arith.constant 0 : index
      %c0_55 = arith.constant 0 : index
      %132 = vector.load %arg12[%c0_54, %c0_55] : memref<1x128xf32, #tpu.memory_space<vmem>>, vector<1x128xf32>
      %133 = arith.mulf %127, %127 : vector<16x128xf32>
      %cst_56 = arith.constant dense<0.000000e+00> : vector<16xf32>
      %134 = vector.multi_reduction <add>, %133, %cst_56 [1] : vector<16x128xf32> to vector<16xf32>
      %135 = vector.shape_cast %134 : vector<16xf32> to vector<16x1xf32>
      %cst_57 = arith.constant 1.280000e+02 : f32
      %136 = vector.broadcast %cst_57 : f32 to vector<16x1xf32>
      %137 = arith.divf %135, %136 : vector<16x1xf32>
      %cst_58 = arith.constant 9.99999997E-7 : f32
      %138 = vector.broadcast %cst_58 : f32 to vector<16x1xf32>
      %139 = arith.addf %137, %138 : vector<16x1xf32>
      %140 = math.rsqrt %139 : vector<16x1xf32>
      %141 = vector.broadcast %140 : vector<16x1xf32> to vector<16x128xf32>
      %142 = arith.mulf %127, %141 : vector<16x128xf32>
      %143 = vector.broadcast %132 : vector<1x128xf32> to vector<16x128xf32>
      %144 = arith.mulf %143, %142 : vector<16x128xf32>
      %145 = arith.truncf %144 : vector<16x128xf32> to vector<16x128xbf16>
      %c0_59 = arith.constant 0 : index
      %c0_60 = arith.constant 0 : index
      %146 = vector.load %arg13[%c0_59, %c0_60] : memref<128x128xbf16, #tpu.memory_space<vmem>>, vector<128x128xbf16>
      %cst_61 = arith.constant dense<0.000000e+00> : vector<16x128xf32>
      %147 = tpu.matmul %145, %146, %cst_61 {dimension_numbers = #tpu.dot_dimension_numbers<[1], [0], [0], [1], [0, 0, 1, 1], [], []>} : vector<16x128xbf16>, vector<128x128xbf16>, vector<16x128xf32> -> vector<16x128xf32>
      %c0_62 = arith.constant 0 : index
      %c0_63 = arith.constant 0 : index
      %148 = vector.load %arg14[%c0_62, %c0_63] : memref<16x128xf32, #tpu.memory_space<vmem>>, vector<16x128xf32>
      tpu.vector_store %arg14[%c0_62, %c0_63], %147 {strides = array<i32>} : memref<16x128xf32, #tpu.memory_space<vmem>>, vector<16x128xf32>,
    } else {
    }
    return
  }
  func.func @transform_0(%arg0: i32, %arg1: i32) -> (i32, i32) {
    %c0_i32 = arith.constant 0 : i32
    %c0_i32_0 = arith.constant 0 : i32
    return %arg0, %c0_i32 : i32, i32
  }
  func.func @transform_1(%arg0: i32, %arg1: i32) -> (i32, i32, i32) {
    %c0_i32 = arith.constant 0 : i32
    %c0_i32_0 = arith.constant 0 : i32
    %c0_i32_1 = arith.constant 0 : i32
    return %arg1, %c0_i32, %c0_i32_0 : i32, i32, i32
  }
  func.func @transform_2(%arg0: i32, %arg1: i32) -> (i32, i32, i32) {
    %c0_i32 = arith.constant 0 : i32
    %c0_i32_0 = arith.constant 0 : i32
    %c0_i32_1 = arith.constant 0 : i32
    return %arg1, %c0_i32, %c0_i32_0 : i32, i32, i32
  }
  func.func @transform_3(%arg0: i32, %arg1: i32) -> (i32, i32, i32) {
    %c0_i32 = arith.constant 0 : i32
    %c0_i32_0 = arith.constant 0 : i32
    %c0_i32_1 = arith.constant 0 : i32
    return %arg1, %c0_i32, %c0_i32_0 : i32, i32, i32
  }
  func.func @transform_4(%arg0: i32, %arg1: i32) -> (i32, i32, i32) {
    %c0_i32 = arith.constant 0 : i32
    %c0_i32_0 = arith.constant 0 : i32
    %c0_i32_1 = arith.constant 0 : i32
    return %arg1, %c0_i32, %c0_i32_0 : i32, i32, i32
  }
  func.func @transform_5(%arg0: i32, %arg1: i32) -> (i32, i32, i32) {
    %c0_i32 = arith.constant 0 : i32
    %c0_i32_0 = arith.constant 0 : i32
    %c0_i32_1 = arith.constant 0 : i32
    return %arg1, %c0_i32, %c0_i32_0 : i32, i32, i32
  }
  func.func @transform_6(%arg0: i32, %arg1: i32) -> (i32, i32, i32) {
    %c0_i32 = arith.constant 0 : i32
    %c0_i32_0 = arith.constant 0 : i32
    %c0_i32_1 = arith.constant 0 : i32
    return %arg1, %c0_i32, %c0_i32_0 : i32, i32, i32
  }
  func.func @transform_7(%arg0: i32, %arg1: i32) -> (i32, i32, i32) {
    %c0_i32 = arith.constant 0 : i32
    %c0_i32_0 = arith.constant 0 : i32
    %c0_i32_1 = arith.constant 0 : i32
    %c0_i32_2 = arith.constant 0 : i32
    return %c0_i32, %c0_i32_0, %c0_i32_1 : i32, i32, i32
  }
  func.func @transform_8(%arg0: i32, %arg1: i32) -> (i32, i32, i32) {
    %c0_i32 = arith.constant 0 : i32
    %c0_i32_0 = arith.constant 0 : i32
    %c0_i32_1 = arith.constant 0 : i32
    %c0_i32_2 = arith.constant 0 : i32
    return %c0_i32, %c0_i32_0, %c0_i32_1 : i32, i32, i32
  }
  func.func @transform_9(%arg0: i32, %arg1: i32) -> (i32, i32, i32) {
    %c0_i32 = arith.constant 0 : i32
    %c0_i32_0 = arith.constant 0 : i32
    %c0_i32_1 = arith.constant 0 : i32
    return %arg0, %c0_i32, %c0_i32_0 : i32, i32, i32
  }
  func.func @transform_10(%arg0: i32, %arg1: i32) -> (i32, i32) {
    %c0_i32 = arith.constant 0 : i32
    %c0_i32_0 = arith.constant 0 : i32
    %c0_i32_1 = arith.constant 0 : i32
    return %c0_i32, %c0_i32_0 : i32, i32
  }
  func.func @transform_11(%arg0: i32, %arg1: i32) -> (i32, i32) {
    %c0_i32 = arith.constant 0 : i32
    %c0_i32_0 = arith.constant 0 : i32
    %c0_i32_1 = arith.constant 0 : i32
    return %c0_i32, %c0_i32_0 : i32, i32
  }
  func.func @transform_12(%arg0: i32, %arg1: i32) -> (i32, i32) {
    %c0_i32 = arith.constant 0 : i32
    %c0_i32_0 = arith.constant 0 : i32
    return %arg0, %c0_i32 : i32, i32
  }
}

</mosaic_0001>

<bundles_post_ra>
// kernel: tpu_custom_call.1
= control target key start
LH: loop header
LB: loop body
LE: loop exit
PB: predicated region body
PF: predicated region fallthrough
CT: control target
= control target key end

     0   :  { %s4108_s0 = inlined_call_operand.hbm [shape: f32[32,128], index: 0, kind: input, shape index: {}]   ;;  %s4109_s1 = inlined_call_operand.hbm [shape: bf16[2,128,384], index: 1, kind: input, shape index: {}]   ;;  %s4110_s2 = inlined_call_operand.hbm [shape: bf16[2,128,128], index: 2, kind: input, shape index: {}]   ;;  %s4111_s3 = inlined_call_operand.hbm [shape: bf16[2,128,512], index: 3, kind: input, shape index: {}]   ;;  %s4112_s4 = inlined_call_operand.hbm [shape: bf16[2,256,128], index: 4, kind: input, shape index: {}]   ;;  %s4113_s5 = inlined_call_operand.vmem [shape: f32[2,1,128], index: 5, kind: input, shape index: {}]   ;;  %s4114_s6 = inlined_call_operand.vmem [shape: f32[2,1,128], index: 6, kind: input, shape index: {}]   ;;  %s4115_s7 = inlined_call_operand.hbm [shape: f32[1,16,64], index: 7, kind: input, shape index: {}]   ;;  %s4116_s8 = inlined_call_operand.hbm [shape: f32[1,16,64], index: 8, kind: input, shape index: {}]   ;;  %s4117_s9 = inlined_call_operand.vmem [shape: f32[2,1,16], index: 9, kind: input, shape index: {}]   ;;  %s4118_s10 = inlined_call_operand.vmem [shape: f32[1,128], index: 10, kind: input, shape index: {}]   ;;  %s4119_s11 = inlined_call_operand.hbm [shape: bf16[128,128], index: 11, kind: input, shape index: {}]   ;;  %s4120_s12 = inlined_call_operand.hbm [shape: f32[32,128], index: 12, kind: output, shape index: {}]  }
   0x1   :  { %4146 = sst [smem:[#allocation39_spill]] %s4108_s0 }
   0x2   :  { %4147 = sst [smem:[#allocation40_spill]] %s4109_s1 }
   0x3   :  { %4148 = sst [smem:[#allocation41_spill]] %s4110_s2 }
   0x4   :  { %4149 = sst [smem:[#allocation42_spill]] %s4111_s3 }
   0x5   :  { %4150 = sst [smem:[#allocation43_spill]] %s4112_s4 }
   0x6   :  { %4151 = sst [smem:[#allocation44_spill]] %s4113_s5 }
   0x7   :  { %4152 = sst [smem:[#allocation45_spill]] %s4114_s6 }
   0x8   :  { %4153 = sst [smem:[#allocation46_spill]] %s4115_s7 }
   0x9   :  { %4154 = sst [smem:[#allocation47_spill]] %s4116_s8 }
   0xa   :  { %4155 = sst [smem:[#allocation48_spill]] %s4117_s9 }
   0xb   :  { %4156 = sst [smem:[#allocation49_spill]] %s4118_s10 }
   0xc   :  { %4157 = sst [smem:[#allocation50_spill]] %s4119_s11 }
   0xd   :  { %4158 = sst [smem:[#allocation51_spill]] %s4120_s12 }
   0xe   :  { %17 = vsyncpa [#allocation5], 0 }
   0xf   :  { %19 = vsyncpa [#allocation5 + $0x1], 0 }
  0x10   :  { %20 = vsyncpa [#allocation8], 0 }
  0x11   :  { %22 = vsyncpa [#allocation8 + $0x1], 0 }
  0x12   :  { %23 = vsyncpa [#allocation11], 0 }
  0x13   :  { %25 = vsyncpa [#allocation11 + $0x1], 0 }
  0x14   :  { %26 = vsyncpa [#allocation14], 0 }
  0x15   :  { %27 = vsyncpa [#allocation17], 0 }
  0x16   :  { %28 = vsyncpa [#allocation6], 0 }
  0x17   :  { %30 = vsyncpa [#allocation6 + $0x1], 0  ;;  %s3461_s21 = smov 0   ;;  %s3463_s22 = smov 0  }
  0x18   :  { %s3465_s23 = smov 0   ;;  %s3467_s24 = smov 0  }
  0x19   :  { %s3469_s25 = smov 0   ;;  %s3471_s26 = smov 0  }
  0x1a   :  { %s3473_s27 = smov 0   ;;  %s3475_s28 = smov 0  }
  0x1b   :  { %s3477_s29 = smov 0   ;;  %s3479_s30 = smov 0  }
  0x1c   :  { %s3481_s13 = smov 0  }
  0x1d LB: > { %4159 = sst [smem:[#allocation25_spill]] %s3341_s22  ;;  %s3515_s14 = sadd.s32 4294967295, %s3377_s13   ;;  %s3377_s13 = sphi %s3481_s13, %s36_s13   ;;  %s3373_s30 = sphi %s3479_s30, %s4224_s30   ;;  %s3369_s29 = sphi %s3477_s29, %s4228_s29   ;;  %s3365_s28 = sphi %s3475_s28, %s4222_s28   ;;  %s3361_s27 = sphi %s3473_s27, %s4227_s27   ;;  %s3357_s26 = sphi %s3471_s26, %s4221_s26   ;;  %s3353_s25 = sphi %s3469_s25, %s4226_s25   ;;  %s3349_s24 = sphi %s3467_s24, %s4225_s24   ;;  %s3345_s23 = sphi %s3465_s23, %s4219_s23   ;;  %s3341_s22 = sphi %s3463_s22, %s4218_s22   ;;  %s3337_s21 = sphi %s3461_s21, %s4217_s21  }
  0x1e   : > { %4160 = sst [smem:[#allocation26_spill]] %s3345_s23  ;;  %p94_p0 = scmp.ne.s32.totalorder %s3341_s22, %s3337_s21 }
  0x1f   : > { %4161 = sst [smem:[#allocation27_spill]] %s3357_s26  ;;  %p69_p1 = scmp.eq.s32.totalorder %s3515_s14, 0 }
  0x20   : > { %4162 = sst [smem:[#allocation28_spill]] %s3361_s27  ;;  %p358_p2 = scmp.eq.s32.totalorder %s3515_s14, 3 }
  0x21   : > { %4163 = sst [smem:[#allocation29_spill]] %s3365_s28  ;;  %p2282_p3 = scmp.ge.s32.totalorder %s3377_s13, 1 }
  0x22   : > { %4164 = sst [smem:[#allocation30_spill]] %s3373_s30  ;;  %p371_p4 = scmp.lt.s32.totalorder %s3377_s13, 5 }
  0x23   : > { %4165 = sst [smem:[#allocation31_spill]] %s3515_s14  ;;  %p3524_p5 = por %p94_p0, %p69_p1 }
  0x24   : > { %p3528_p6 = pnand %p2282_p3, %p371_p4  ;;  %s4170_s7 = sld [smem:[#allocation46_spill]] }
  0x25   : > { %s4166_s15 = scalar_select %p3524_p5, 1, 0 }
  0x26   : > { %s4168_s16 = scalar_select %p3528_p6, 1, 0 }
  0x27   : > { %4167 = sst [smem:[#allocation32_spill]] %s4166_s15  ;;  %p2801_p7 = pneg %p3528_p6 }
  0x28   : > { %4169 = sst [smem:[#allocation33_spill]] %s4168_s16  ;;  %s3379_s20 = smov [#allocation13]  }
  0x29   : > { %s384_s21 = sshll.u32 %s3379_s20, 4  ;;  %p3539_p8 = pnand %p2801_p7, %p69_p1  ;;  %s385_s21 = int_to_ptr.vmem [resolvable:$true] %s384_s21 }
  0x2a   : > { %s382_s19 = sshll.u32 %s4170_s7, 4  ;;  %s4122_s17 = smov 128   ;;  %s383_s19 = int_to_ptr.hbm [resolvable:$true] %s382_s19 }
  0x2b   : > { %s4124_s18 = smov 8   ;;  %s45_s7 = sadd.s32 1, %s3369_s29 }
  0x2c   : > { %2804 = dma.hbm_to_vmem [thread:$0]  (!%p3539_p8), %s383_s19, 256, %s385_s21, [#allocation14], %s4122_s17, %s4122_s17, %s4124_s18  }
  0x2d   : > { %p63_p9 = scmp.eq.s32.totalorder %s3377_s13, 0  ;;  %p3550_p10 = scmp.ge.s32.totalorder %s45_s7, 2 }
  0x2e   : > { %s81_s10 = sadd.s32 1, %s3345_s23  ;;  %p88_p11 = scmp.ne.s32.totalorder %s3345_s23, %s3341_s22 }
  0x2f   : > { %p4137_p12 = scmp.lt.s32.totalorder %s3377_s13, 4  ;;  %s4230_s7 = smov (%p3550_p10, %s45_s7), 0 }
  0x30   : > { %4173 = sst [smem:[#allocation34_spill]] %s4230_s7  ;;  %p90_p13 = por %p88_p11, %p63_p9 }
  0x31   : > { %s451_s9 = sand.u32 1, %s3377_s13   ;;  %s78_s6 = ssub.s32 %s3369_s29, %s4230_s7 }
  0x32   : > { %p79_p0 = scmp.eq.s32.totalorder %s78_s6, 0  ;;  %s3568_s19 = sand.u32 1, %s3345_s23  }
  0x33   : > { %s2774_s21 = smul.u32 192, %s3568_s19  ;;  %p3573_p3 = pnand %p4137_p12, %p90_p13 }
  0x34   : > { %s3578_s18 = scalar_select %p79_p0, %s3345_s23, %s81_s10  }
  0x35   : > { %s2775_s5 = smul.u32 192, %s3369_s29  ;;  %s455_s28 = scalar_lea.vmem [#allocation7], %s2774_s21 }
  0x36   : > { %4175 = sst [smem:[#allocation35_spill]] %s3578_s18  ;;  %s463_s27 = sshll.u32 %s455_s28, 4  ;;  %s464_s27 = int_to_ptr.vmem [resolvable:$true] %s463_s27 }
  0x37   : > { %s4176_s1 = sld [smem:[#allocation40_spill]]  ;;  %s3584_s16 = scalar_lea.sflag [#allocation8], %s451_s9 }
  0x38   : > { %s3382_s4 = smov 192   ;;  %s3383_s2 = smov 12  }
  0x39   : > { %s2294_s10 = sshll.u32 %s3568_s19, 8  ;;  %s2682_s18 = sshll.u32 %s3369_s29, 8 }
  0x3a   : > { %s4177_s3 = sld [smem:[#allocation42_spill]]  ;;  %s499_s0 = scalar_lea.vmem [#allocation10], %s2294_s10 }
  0x3b   : > { %s4178_s8 = sld [smem:[#allocation47_spill]]  ;;  %s3597_s14 = scalar_lea.sflag [#allocation11], %s451_s9 }
  0x3c   : > { %s4179_s11 = sld [smem:[#allocation50_spill]]  ;;  %s4181_s10 = smov 128  }
  0x3d   : > { %s460_s6 = scalar_lea.hbm %s4176_s1, %s2775_s5  ;;  %s507_s5 = sshll.u32 %s499_s0, 4  ;;  %s508_s5 = int_to_ptr.vmem [resolvable:$true] %s507_s5 }
  0x3e   : > { %s461_s22 = sshll.u32 %s460_s6, 4  ;;  %s3386_s0 = smov [#allocation15]   ;;  %s462_s22 = int_to_ptr.hbm [resolvable:$true] %s461_s22 }
  0x3f   : > { %2817 = dma.hbm_to_vmem [thread:$0]  (!%p3573_p3), %s462_s22, 3072, %s464_s27, %s3584_s16, %s3382_s4, %s3382_s4, %s3383_s2  }
  0x40   : > { %s504_s28 = scalar_lea.hbm %s4177_s3, %s2682_s18  ;;  %s3384_s2 = smov 256  }
  0x41   : > { %s505_s7 = sshll.u32 %s504_s28, 4  ;;  %s396_s1 = sshll.u32 %s4178_s8, 4  ;;  %s506_s7 = int_to_ptr.hbm [resolvable:$true] %s505_s7  ;;  %s397_s1 = int_to_ptr.hbm [resolvable:$true] %s396_s1 }
  0x42   : > { %s3385_s4 = smov 16   ;;  %s398_s22 = sshll.u32 %s3386_s0, 4  ;;  %s399_s22 = int_to_ptr.vmem [resolvable:$true] %s398_s22 }
  0x43   : > { %2823 = dma.hbm_to_vmem [thread:$0]  (!%p3573_p3), %s506_s7, 4096, %s508_s5, %s3597_s14, %s3384_s2, %s3384_s2, %s3385_s4  }
  0x44   : > { %s413_s9 = sshll.u32 %s4179_s11, 4  ;;  %s4180_s18 = smov 8   ;;  %s414_s9 = int_to_ptr.hbm [resolvable:$true] %s413_s9 }
  0x45   : > { %2807 = dma.hbm_to_vmem [thread:$0]  (!%p3539_p8), %s397_s1, 256, %s399_s22, [#allocation14], %s4181_s10, %s4181_s10, %s4180_s18  }
  0x46   : > { %s3387_s28 = smov [#allocation16]   ;;  %s4138_s7 = smov 64  }
  0x47   : > { %s415_s5 = sshll.u32 %s3387_s28, 4  ;;  %s4140_s15 = smov 4   ;;  %s416_s5 = int_to_ptr.vmem [resolvable:$true] %s415_s5 }
  0x48   : > { %2810 = dma.hbm_to_vmem [thread:$0]  (!%p3539_p8), %s414_s9, 1024, %s416_s5, [#allocation17], %s4138_s7, %s4138_s7, %s4140_s15  }
  0x49   : > { %s2281_s6 = sadd.s32 4294967294, %s3377_s13   ;;  %s48_s2 = sadd.s32 1, %s3373_s30 }
  0x4a   : > { %s55_s4 = sadd.s32 1, %s3357_s26  ;;  %s4232_s2 = smov (!%p3550_p10, %s48_s2), %s3373_s30 }
  0x4b   : > { %p62_p4 = scmp.ne.s32.totalorder %s3357_s26, %s3353_s25  ;;  %p68_p7 = scmp.ne.s32.totalorder %s3353_s25, %s3349_s24 }
  0x4c   : > { %p50_p11 = scmp.ge.s32.totalorder %s4232_s2, 2  ;;  %p364_p13 = scmp.eq.s32.totalorder %s2281_s6, 3 }
  0x4d   : > { %p3627_p0 = por %p63_p9, %p62_p4  ;;  %p3633_p12 = por %p69_p1, %p68_p7 }
  0x4e   : > { %s4234_s2 = smov (%p50_p11, %s4232_s2), 0  ;;  %p3641_p8 = por %p358_p2, %p62_p4 }
  0x4f   : > { %4185 = sst [smem:[#allocation36_spill]] %s4234_s2  ;;  %p3645_p9 = por %p364_p13, %p68_p7 }
  0x50   : > { %s52_s22 = ssub.s32 %s3373_s30, %s4234_s2  ;;  %s429_s23 = sand.u32 1, %s3357_s26  }
  0x51   : > { %s4187_s0 = scalar_select %p3645_p9, 1, 0 }
  0x52   : > { %p53_p10 = scmp.eq.s32.totalorder %s52_s22, 0  ;;  %s2287_s27 = sshll.u32 %s429_s23, 4 }
  0x53   : > { %4188 = sst [smem:[#allocation37_spill]] %s4187_s0  ;;  %s2680_s9 = sshll.u32 %s3373_s30, 4 }
  0x54   : > { %s3654_s28 = scalar_select %p53_p10, %s3357_s26, %s55_s4  }
  0x55   : > { %s4190_s6 = sld [smem:[#allocation39_spill]]  ;;  %s433_s3 = scalar_lea.vmem [#allocation4], %s2287_s27 }
  0x56   : > { %4189 = sst [smem:[#allocation38_spill]] %s3654_s28  ;;  %s441_s8 = sshll.u32 %s433_s3, 4  ;;  %s442_s8 = int_to_ptr.vmem [resolvable:$true] %s441_s8 }
  0x57   : > { %p4191_p2 = scmp.lt.s32.totalorder %s3377_s13, 4  ;;  %s2291_s22 = sshll.u32 %s3568_s19, 6 }
  0x58   : > { %s2681_s11 = sshll.u32 %s3369_s29, 6  ;;  %s4192_s30 = sld [smem:[#allocation41_spill]] }
  0x59   : > { %p2812_p4 = pnand %p4191_p2, %p3627_p0  ;;  %s430_s5 = scalar_lea.sflag [#allocation5], %s429_s23 }
  0x5a   : > { %s4193_s1 = smov 4   ;;  %s2297_s21 = sshll.u32 %s3568_s19, 7 }
  0x5b   : > { %s438_s7 = scalar_lea.hbm %s4190_s6, %s2680_s9  ;;  %s4194_s9 = smov 64  }
  0x5c   : > { %s439_s15 = sshll.u32 %s438_s7, 4  ;;  %s477_s7 = scalar_lea.vmem [#allocation9], %s2291_s22  ;;  %s440_s15 = int_to_ptr.hbm [resolvable:$true] %s439_s15 }
  0x5d   : > { %2814 = dma.hbm_to_vmem [thread:$0]  (!%p2812_p4), %s440_s15, 256, %s442_s8, %s430_s5, %s4181_s10, %s4181_s10, %s4180_s18  }
  0x5e   : > { %s482_s28 = scalar_lea.hbm %s4192_s30, %s2681_s11  ;;  %s485_s27 = sshll.u32 %s477_s7, 4  ;;  %s486_s27 = int_to_ptr.vmem [resolvable:$true] %s485_s27 }
  0x5f   : > { %s483_s3 = sshll.u32 %s482_s28, 4  ;;  %s2683_s2 = sshll.u32 %s3369_s29, 7  ;;  %s484_s3 = int_to_ptr.hbm [resolvable:$true] %s483_s3 }
  0x60   : > { %2820 = dma.hbm_to_vmem [thread:$0]  (!%p3573_p3), %s484_s3, 1024, %s486_s27, %s3584_s16, %s4194_s9, %s4194_s9, %s4193_s1  }
  0x61   : > { %s4195_s23 = sld [smem:[#allocation43_spill]]  ;;  %s521_s26 = scalar_lea.vmem [#allocation12], %s2297_s21 }
  0x62   : > { %s529_s0 = sshll.u32 %s521_s26, 4  ;;  %s3691_s16 = sand.u32 (!%p3528_p6), 1, %s3353_s25   ;;  %s530_s0 = int_to_ptr.vmem [resolvable:$true] %s529_s0 }
  0x63   : > { %s2301_s19 = sshll.u32 (!%p3528_p6), %s3691_s16, 4  ;;  %s562_s18 = scalar_lea.sflag (!%p3528_p6), [#allocation5], %s3691_s16 }
  0x64   : > { %s3697_s26 = scalar_lea.vmem (!%p3528_p6), [#allocation4], %s2301_s19 }
  0x65   : > { %559 = sbr.rel (%p3528_p6) target bundleno = 2274 (0x8e2), region = 68 }
  0x67   : > { %s526_s6 = scalar_lea.hbm %s4195_s23, %s2683_s2 }
  0x68   : > { %s527_s4 = sshll.u32 %s526_s6, 4  ;;  %s528_s4 = int_to_ptr.hbm [resolvable:$true] %s527_s4 }
  0x69   : > { %2826 = dma.hbm_to_vmem [thread:$0]  (!%p3573_p3), %s528_s4, 2048, %s530_s0, %s3597_s14, %s4194_s9, %s4194_s9, %s4193_s1  }
  0x6a   : > { %3312 = dma.done.wait (%p3633_p12), %s562_s18, 256  }
  0x6b   : > { %3314 = vsyncadd (%p3633_p12), %s562_s18, 4294967040  ;;  %s4197_s14 = sld [smem:[#allocation31_spill]] }
  0x6c   : > { %s4198_s17 = sld [smem:[#allocation25_spill]] }
  0x71   : > { %s571_s15 = sand.u32 1, %s4197_s14  }
  0x72   : > { %s573_s0 = sand.u32 1, %s4198_s17   ;;  %s572_s22 = scalar_lea.sflag [#allocation8], %s571_s15 }
  0x73   : > { %s2776_s28 = smul.u32 192, %s573_s0 }
  0x75   : > { %s3705_s5 = scalar_lea.vmem [#allocation7], %s2776_s28 }
  0x76   : > { %3316 = dma.done.wait (%p3524_p5), %s572_s22, 4096  }
  0x77   : > { %3318 = vsyncadd (%p3524_p5), %s572_s22, 4294963200  ;;  %s2302_s3 = sshll.u32 %s573_s0, 6  ;;  %s2303_s7 = sshll.u32 %s573_s0, 8 }
  0x78   : > { %s3711_s27 = scalar_lea.vmem [#allocation9], %s2302_s3  ;;  %s592_s12 = scalar_lea.sflag [#allocation11], %s571_s15 }
  0x79   : > { %s3713_s1 = scalar_lea.vmem [#allocation10], %s2303_s7 }
  0x7a   : > { %3320 = dma.done.wait (%p3524_p5), %s592_s12, 6144  }
  0x7b   : > { %3322 = vsyncadd (%p3524_p5), %s592_s12, 4294961152  ;;  %s2304_s9 = sshll.u32 %s573_s0, 7 }
  0x7c   : > { %s3719_s21 = scalar_lea.vmem [#allocation12], %s2304_s9 }
  0x7d   : > { %3324 = dma.done.wait (%p69_p1), [#allocation14], 512  }
  0x7e   : > { %3326 = vsyncadd (%p69_p1), [#allocation14], 4294966784 }
  0x7f   : > { %3328 = dma.done.wait (%p69_p1), [#allocation17], 1024  }
  0x80   : > { %3330 = vsyncadd (%p69_p1), [#allocation17], 4294966272  ;;  %s4200_s2 = sld [smem:[#allocation28_spill]]  ;;  %s3751_s3 = scalar_lea.vmem [#allocation18], %s2301_s19 }
  0x81   : > { %s4201_s11 = sld [smem:[#allocation29_spill]] }
  0x82   : > { %s4202_s4 = sld [smem:[#allocation44_spill]] }
  0x83   : > { %s4203_s17 = sld [smem:[#allocation45_spill]] }
  0x84   : > { %s4204_s28 = sld [smem:[#allocation48_spill]] }
  0x86   : > { %p692_p5 = scmp.lt.s32.totalorder %s4200_s2, 1  ;;  %p2309_p1 = scmp.ne.s32.totalorder %s4200_s2, 0 }
  0x87   : > { %p698_p6 = scmp.lt.s32.totalorder %s4201_s11, 1 }
  0x88   : > { %s3732_s30 = scalar_select %p692_p5, %s4200_s2, 1 }
  0x89   : > { %s4236_s11 = smov (!%p698_p6, %s4201_s11), 1  ;;  %706 = sbr.rel (%p2309_p1) target bundleno = 145 (0x91), region = 104 }
  0x8a   : > { %s694_s8 = scalar_lea.vmem %s4202_s4, %s3732_s30  ;;  %s697_s10 = scalar_lea.vmem %s4203_s17, %s3732_s30 }
  0x8b   : > { %s700_s22 = scalar_lea.vmem %s4204_s28, %s4236_s11 }
  0x8e   : > { %v707_v0 = vld [vmem:[%s3697_s26] sm:$0xff]  ;;  %v708_v1 = vld [vmem:[%s3697_s26 + $0x8] sm:$0xff] }
  0x8f   : > { %709 = vst [vmem:[#allocation2] sm:$0xff] %v707_v0 }
  0x90   : > { %710 = vst [vmem:[#allocation2 + $0x8] sm:$0xff] %v708_v1 }
  0x91 PF: > { %v2396_v6 = vld [vmem:[%s3705_s5 + $0xa8] sm:$0xf]  ;;  %v2706_v7 = vld [vmem:[%s3705_s5 + $0xb0] sm:$0xf0]  ;;  %v2705_v8 = vld [vmem:[%s3705_s5 + $0xac] sm:$0xf] }
  0x92   : > { %v2397_v9 = vor.u32 %v2706_v7, %v2396_v6  ;;  %v2398_v10 = vld [vmem:[%s3705_s5 + $0xb4] sm:$0xf0]  ;;  %v2404_v11 = vld [vmem:[%s3705_s5 + $0xb0] sm:$0xf]  ;;  %v2707_v12 = vld [vmem:[%s3705_s5 + $0xb8] sm:$0xf0] }
  0x93   : > { %v3390_v13 = vmov 128.0   ;;  %v2401_v14 = vor.u32 %v2705_v8, %v2398_v10  ;;  %v2405_v15 = vor.u32 %v2707_v12, %v2404_v11  ;;  %v2384_v16 = vld [vmem:[%s3705_s5 + $0x90] sm:$0xf]  ;;  %v2703_v17 = vld [vmem:[%s3705_s5 + $0x98] sm:$0xf0]  ;;  %s3391_s7 = smov 64  }
  0x94   : > { %2952 = vrcp.f32 %v3390_v13  ;;  %919 = vmatpush.bf16.msra.mxu0 %v2397_v9  ;;  %v2702_v18 = vld [vmem:[%s3705_s5 + $0x94] sm:$0xf]  ;;  %v2385_v19 = vor.u32 %v2703_v17, %v2384_v16  ;;  %v2386_v20 = vld [vmem:[%s3705_s5 + $0x9c] sm:$0xf0]  ;;  %v2392_v21 = vld [vmem:[%s3705_s5 + $0x98] sm:$0xf] }
  0x95   : > { %933 = vmatpush.bf16.msra.mxu1 %v2401_v14  ;;  %947 = vmatpush.bf16.msra.mxu2 %v2405_v15  ;;  %v2704_v22 = vld [vmem:[%s3705_s5 + $0xa0] sm:$0xf0]  ;;  %v2389_v23 = vor.u32 %v2702_v18, %v2386_v20  ;;  %v2372_v26 = vld [vmem:[%s3705_s5 + $0x78] sm:$0xf]  ;;  %v2699_v28 = vld [vmem:[%s3705_s5 + $0x7c] sm:$0xf] }
  0x96   : > { %v3756_v2 = vld [vmem:[#allocation2] sm:$0xff]  ;;  %v2393_v24 = vor.u32 %v2704_v22, %v2392_v21  ;;  %v2700_v27 = vld [vmem:[%s3705_s5 + $0x80] sm:$0xf0]  ;;  %v2380_v31 = vld [vmem:[%s3705_s5 + $0x80] sm:$0xf]  ;;  %s3392_s12 = smov 32  }
  0x97   : > { %v714_v3 = vmul.f32 %v3756_v2, %v3756_v2  ;;  %v3760_v4 = vld [vmem:[#allocation2 + $0x8] sm:$0xff]  ;;  %v2373_v29 = vor.u32 %v2700_v27, %v2372_v26  ;;  %v2374_v30 = vld [vmem:[%s3705_s5 + $0x84] sm:$0xf0]  ;;  %v2701_v32 = vld [vmem:[%s3705_s5 + $0x88] sm:$0xf0]  ;;  %s3393_s9 = smov 96  }
  0x98   : > { %v715_v5 = vmul.f32 %v3760_v4, %v3760_v4  ;;  %920 = vmatpush.bf16.msra.mxu0 %v2385_v19  ;;  %v2377_v33 = vor.u32 %v2699_v28, %v2374_v30  ;;  %v2381_v34 = vor.u32 %v2701_v32, %v2380_v31  ;;  %v2360_v36 = vld [vmem:[%s3705_s5 + $0x60] sm:$0xf]  ;;  %v2697_v37 = vld [vmem:[%s3705_s5 + $0x68] sm:$0xf0]  ;;  %v2696_v38 = vld [vmem:[%s3705_s5 + $0x64] sm:$0xf] }
  0x99   : > { %716 = vadd.xlane.f32.xlu0 %v714_v3  ;;  %934 = vmatpush.bf16.msra.mxu1 %v2389_v23  ;;  %v2361_v39 = vor.u32 %v2697_v37, %v2360_v36  ;;  %v2362_v40 = vld [vmem:[%s3705_s5 + $0x6c] sm:$0xf0]  ;;  %v2368_v41 = vld [vmem:[%s3705_s5 + $0x68] sm:$0xf]  ;;  %v2698_v42 = vld [vmem:[%s3705_s5 + $0x70] sm:$0xf0] }
  0x9a   : > { %v3776_v25 = vpop.eup %2952  ;;  %948 = vmatpush.bf16.msra.mxu2 %v2393_v24  ;;  %v2365_v43 = vor.u32 %v2696_v38, %v2362_v40  ;;  %v2369_v44 = vor.u32 %v2698_v42, %v2368_v41  ;;  %v2348_v46 = vld [vmem:[%s3705_s5 + $0x48] sm:$0xf]  ;;  %v2694_v47 = vld [vmem:[%s3705_s5 + $0x50] sm:$0xf0]  ;;  %v2693_v48 = vld [vmem:[%s3705_s5 + $0x4c] sm:$0xf] }
  0x9b   : > { %v721_v35 = vmul.f32 128.0, %v3776_v25  ;;  %v2349_v49 = vor.u32 %v2694_v47, %v2348_v46  ;;  %v2350_v50 = vld [vmem:[%s3705_s5 + $0x54] sm:$0xf0]  ;;  %v2356_v51 = vld [vmem:[%s3705_s5 + $0x50] sm:$0xf]  ;;  %vm725_vm0 = vweird.f32 %v3776_v25  ;;  %vm1021_vm7 = vcmask 261120  }
  0x9c   : > { %921 = vmatpush.bf16.msra.mxu0 %v2373_v29  ;;  %v2695_v52 = vld [vmem:[%s3705_s5 + $0x58] sm:$0xf0]  ;;  %v2353_v53 = vor.u32 %v2693_v48, %v2350_v50  ;;  %v2336_v56 = vld [vmem:[%s3705_s5 + $0x30] sm:$0xf]  ;;  %v2690_v58 = vld [vmem:[%s3705_s5 + $0x34] sm:$0xf] }
  0x9d   : > { %935 = vmatpush.bf16.msra.mxu1 %v2377_v33  ;;  %v722_v45 = vsub.f32 1.0, %v721_v35  ;;  %v2357_v54 = vor.u32 %v2695_v52, %v2356_v51  ;;  %v2691_v57 = vld [vmem:[%s3705_s5 + $0x38] sm:$0xf0]  ;;  %v2338_v60 = vld [vmem:[%s3705_s5 + $0x3c] sm:$0xf0]  ;;  %vm1104_vm8 = vcmask 523264  }
  0x9e   : > { %949 = vmatpush.bf16.msra.mxu2 %v2381_v34  ;;  %v2337_v59 = vor.u32 %v2691_v57, %v2336_v56  ;;  %v2344_v61 = vld [vmem:[%s3705_s5 + $0x38] sm:$0xf]  ;;  %v2692_v62 = vld [vmem:[%s3705_s5 + $0x40] sm:$0xf0]  ;;  %v2341_v63 = vor.u32 %v2690_v58, %v2338_v60  ;;  %v2687_v6 = vld [vmem:[%s3705_s5 + $0x1c] sm:$0xf] }
  0x9f   : > { %v723_v55 = vmul.f32 %v3776_v25, %v722_v45  ;;  %v2345_v0 = vor.u32 %v2692_v62, %v2344_v61  ;;  %v2324_v3 = vld [vmem:[%s3705_s5 + $0x18] sm:$0xf]  ;;  %v2326_v8 = vld [vmem:[%s3705_s5 + $0x24] sm:$0xf0]  ;;  %v2332_v9 = vld [vmem:[%s3705_s5 + $0x20] sm:$0xf] }
  0xa0   : > { %922 = vmatpush.bf16.msra.mxu0 %v2361_v39  ;;  %v2689_v10 = vld [vmem:[%s3705_s5 + $0x28] sm:$0xf0]  ;;  %v2329_v11 = vor.u32 %v2687_v6, %v2326_v8  ;;  %v2312_v14 = vld [vmem:[%s3705_s5] sm:$0xf]  ;;  %v2684_v16 = vld [vmem:[%s3705_s5 + $0x4] sm:$0xf] }
  0xa1   : > { %718 = vadd.xlane.f32.xlu0 %v715_v5  ;;  %936 = vmatpush.bf16.msra.mxu1 %v2365_v43  ;;  %v724_v1 = vadd.f32 %v3776_v25, %v723_v55  ;;  %v2688_v5 = vld [vmem:[%s3705_s5 + $0x20] sm:$0xf0]  ;;  %v2333_v12 = vor.u32 %v2689_v10, %v2332_v9  ;;  %v2685_v15 = vld [vmem:[%s3705_s5 + $0x8] sm:$0xf0]  ;;  %v2314_v18 = vld [vmem:[%s3705_s5 + $0xc] sm:$0xf0] }
  0xa2   : > { %950 = vmatpush.bf16.msra.mxu2 %v2369_v44  ;;  %v2325_v7 = vor.u32 %v2688_v5, %v2324_v3  ;;  %v2313_v17 = vor.u32 %v2685_v15, %v2312_v14  ;;  %v2320_v19 = vld [vmem:[%s3705_s5 + $0x8] sm:$0xf]  ;;  %v2686_v20 = vld [vmem:[%s3705_s5 + $0x10] sm:$0xf0]  ;;  %v2317_v22 = vor.u32 %v2684_v16, %v2314_v18  ;;  %v988_v15 = vld [vmem:[#allocation15 + $0x8] sm:$0xff]  ;;  %vm1167_vm9 = vcmask 130048  }
  0xa3   : > { %v3813_v13 = vsel %vm725_vm0, %v3776_v25, %v724_v1  ;;  %v2321_v23 = vor.u32 %v2686_v20, %v2320_v19  ;;  %v2949_v43 = vld [vmem:[%s694_s8] ss:$0 sm:$0xff]  ;;  %v3857_v10 = vld [vmem:[#allocation15] sm:$0xff]  ;;  %vm1278_vm10 = vcmask 519168   ;;  %vm1291_vm11 = vcmask 1043968  }
  0xa4   : > { %923 = vmatpush.bf16.msra.mxu0 %v2349_v49  ;;  %v986_v18 = vld [vmem:[#allocation13 + $0x8] sm:$0xff] }
  0xa5   : > { %937 = vmatpush.bf16.msra.mxu1 %v2353_v53 }
  0xa6   : > { %951 = vmatpush.bf16.msra.mxu2 %v2357_v54 }
  0xa8   : > { %924 = vmatpush.bf16.msra.mxu0 %v2337_v59 }
  0xa9   : > { %938 = vmatpush.bf16.msra.mxu1 %v2341_v63 }
  0xaa   : > { %952 = vmatpush.bf16.msra.mxu2 %v2345_v0 }
  0xac   : > { %925 = vmatpush.bf16.msra.mxu0 %v2325_v7 }
  0xad   : > { %939 = vmatpush.bf16.msra.mxu1 %v2329_v11 }
  0xae   : > { %953 = vmatpush.bf16.msra.mxu2 %v2333_v12  ;;  %v3860_v12 = vld [vmem:[#allocation13] sm:$0xff] }
  0xb0   : > { %926 = vmatpush.bf16.msra.mxu0 %v2313_v17 }
  0xb1   : > { %940 = vmatpush.bf16.msra.mxu1 %v2317_v22 }
  0xb2   : > { %954 = vmatpush.bf16.msra.mxu2 %v2321_v23 }
 0x10c   : > { %v717_v21 = vpop.xlane.xlu0 %716 }
 0x10d   : > { %v727_v24 = vmul.f32 %v3813_v13, %v717_v21 }
 0x10f   : > { %v729_v26 = vadd.f32 1e-06, %v727_v24 }
 0x111   : > { %2954 = vrsqrt.f32 %v729_v26  ;;  %vm737_vm2 = vweird.f32 %v729_v26 }
 0x114   : > { %v719_v25 = vpop.xlane.xlu0 %718 }
 0x115   : > { %v728_v27 = vmul.f32 %v3813_v13, %v719_v25 }
 0x117   : > { %v2955_v28 = vpop.eup %2954  ;;  %v730_v29 = vadd.f32 1e-06, %v728_v27 }
 0x118   : > { %v732_v30 = vmul.f32 %v2955_v28, %v729_v26  ;;  %vm738_vm1 = vweird.f32 %v2955_v28 }
 0x119   : > { %2956 = vrsqrt.f32 %v730_v29  ;;  %vm739_vm3 = vmor %vm737_vm2, %vm738_vm1  ;;  %vm747_vm5 = vweird.f32 %v730_v29 }
 0x11a   : > { %v733_v31 = vmul.f32 %v2955_v28, %v732_v30 }
 0x11c   : > { %v734_v32 = vmul.f32 0.5, %v733_v31 }
 0x11e   : > { %v735_v33 = vsub.f32 1.5, %v734_v32 }
 0x11f   : > { %v2957_v34 = vpop.eup %2956 }
 0x120   : > { %v742_v35 = vmul.f32 %v2957_v34, %v730_v29  ;;  %v736_v36 = vmul.f32 %v2955_v28, %v735_v33  ;;  %vm748_vm4 = vweird.f32 %v2957_v34 }
 0x121   : > { %vm749_vm6 = vmor %vm747_vm5, %vm748_vm4 }
 0x122   : > { %v743_v37 = vmul.f32 %v2957_v34, %v742_v35  ;;  %v740_v39 = vsel %vm739_vm3, %v2955_v28, %v736_v36 }
 0x123   : > { %v751_v42 = vmul.f32 %v740_v39, %v3756_v2 }
 0x124   : > { %v744_v38 = vmul.f32 0.5, %v743_v37 }
 0x125   : > { %v756_v46 = vmul.f32 %v2949_v43, %v751_v42 }
 0x126   : > { %v745_v40 = vsub.f32 1.5, %v744_v38 }
 0x128   : > { %v746_v41 = vmul.f32 %v2957_v34, %v745_v40 }
 0x12a   : > { %v750_v44 = vsel %vm749_vm6, %v2957_v34, %v746_v41 }
 0x12b   : > { %v752_v45 = vmul.f32 %v750_v44, %v3760_v4 }
 0x12d   : > { %v757_v47 = vmul.f32 %v2949_v43, %v752_v45 }
 0x12f   : > { %v758_v48 = vpack.c.bf16 %v757_v47, %v756_v46 }
 0x131   : > { %927 = vmatmul.bf16.vlgmr.msra.gmra.mxu0 %v758_v48  ;;  %941 = vmatmul.bf16.vlgmr.msra.gmra.mxu1 %v758_v48 }
 0x132   : > { %955 = vmatmul.bf16.vlgmr.msra.gmra.mxu2 %v758_v48 }
 0x1ae   : > { %v3830_v49 = vpop.f32.mrf.mxu0  ;;  %v3832_v50 = vpop.f32.mrf.mxu1 }
 0x1af   : > { %971 = vrot.lane.b32.xlu1 %v3832_v50, %s3391_s7  ;;  %963 = vrot.lane.b32.xlu2 %v3830_v49, %s3391_s7  ;;  %v989_v63 = vsub.f32 0.0, %v3830_v49  ;;  %v1038_v0 = vsub.f32 0.0, %v3832_v50 }
 0x1b5   : > { %v3854_v6 = vpop.f32.mrf.mxu2 }
 0x1b6   : > { %v3838_v51 = vpop.f32.mrf.mxu0  ;;  %v3840_v52 = vpop.f32.mrf.mxu1  ;;  %v1216_v30 = vpack.c.bf16 %v3854_v6, %v3854_v6 }
 0x1b7   : > { %973 = vrot.lane.b32.xlu1 %v3840_v52, %s3391_s7  ;;  %965 = vrot.lane.b32.xlu2 %v3838_v51, %s3391_s7  ;;  %v1039_v61 = vsub.f32 0.0, %v3840_v52  ;;  %v990_v62 = vsub.f32 0.0, %v3838_v51 }
 0x1b8   : > { %v1227_v39 = vunpack.c.l.b16 %v1216_v30 }
 0x1bd   : > { %v3863_v19 = vpop.f32.mrf.mxu2 }
 0x1be   : > { %v1217_v26 = vpack.c.bf16 %v3863_v19, %v3863_v19 }
 0x1c0   : > { %v1228_v33 = vunpack.c.l.b16 %v1217_v26 }
 0x1c2   : > { %v1229_v47 = vpack.c.b16 %v1228_v33, %v1227_v39 }
 0x209   : > { %v964_v53 = vpop.permute.xlu2 %963 }
 0x20a   : > { %v991_v56 = vsub.f32 0.0, %v964_v53  ;;  %v1028_v31 = vmul.f32 %v3860_v12, %v964_v53 }
 0x211   : > { %v966_v58 = vpop.permute.xlu2 %965 }
 0x212   : > { %v992_v60 = vsub.f32 0.0, %v966_v58  ;;  %v1029_v40 = vmul.f32 %v986_v18, %v966_v58 }
 0x221   : > { %v972_v54 = vpop.permute.xlu1 %971 }
 0x222   : > { %v1040_v55 = vsub.f32 0.0, %v972_v54  ;;  %1062 = vrot.lane.b32.xlu2 %v972_v54, %s3392_s12  ;;  %v1076_v14 = vmul.f32 %v3860_v12, %v972_v54 }
 0x224   : > { %1050 = vrot.lane.b32.xlu0 %v1040_v55, %s3393_s9 }
 0x229   : > { %v974_v57 = vpop.permute.xlu1 %973 }
 0x22a   : > { %1064 = vrot.lane.b32.xlu1 %v974_v57, %s3392_s12  ;;  %1001 = vrot.lane.b32.xlu2 %v991_v56, %s3393_s9  ;;  %v1041_v59 = vsub.f32 0.0, %v974_v57  ;;  %v1077_v22 = vmul.f32 %v986_v18, %v974_v57 }
 0x22c   : > { %1015 = vrot.lane.b32.xlu0 %v966_v58, %s3392_s12 }
 0x232   : > { %1052 = vrot.lane.b32.xlu1 %v1041_v59, %s3393_s9  ;;  %1013 = vrot.lane.b32.xlu2 %v964_v53, %s3392_s12 }
 0x234   : > { %1058 = vrot.lane.b32.xlu0 %v3832_v50, %s3392_s12 }
 0x23a   : > { %1048 = vrot.lane.b32.xlu2 %v1039_v61, %s3393_s9  ;;  %1003 = vrot.lane.b32.xlu1 %v992_v60, %s3393_s9  ;;  %v1074_v60 = vmul.f32 %v3860_v12, %v3832_v50 }
 0x23c   : > { %999 = vrot.lane.b32.xlu0 %v990_v62, %s3393_s9 }
 0x242   : > { %997 = vrot.lane.b32.xlu2 %v989_v63, %s3393_s9  ;;  %1046 = vrot.lane.b32.xlu1 %v1038_v0, %s3393_s9 }
 0x24a   : > { %1011 = vrot.lane.b32.xlu2 %v3838_v51, %s3392_s12  ;;  %1060 = vrot.lane.b32.xlu1 %v3840_v52, %s3392_s12 }
 0x252   : > { %1009 = vrot.lane.b32.xlu1 %v3830_v49, %s3392_s12 }
 0x27c   : > { %v1063_v1 = vpop.permute.xlu2 %1062 }
 0x284   : > { %v1002_v3 = vpop.permute.xlu2 %1001 }
 0x28c   : > { %v1014_v9 = vpop.permute.xlu2 %1013 }
 0x28d   : > { %v1024_v20 = vsel %vm1021_vm7, %v1002_v3, %v1014_v9 }
 0x28e   : > { %v1032_v25 = vmul.f32 %v1024_v20, %v3857_v10 }
 0x290   : > { %v1036_v34 = vadd.f32 %v1032_v25, %v1028_v31 }
 0x292   : > { %v1088_v43 = vpack.c.bf16 %v1036_v34, %v1036_v34 }
 0x294   : > { %v1049_v27 = vpop.permute.xlu2 %1048  ;;  %v1127_v54 = vunpack.c.l.b16 %v1088_v43  ;;  %v2944_v43 = vpack.i.bf16 %v3863_v19, %v3854_v6 }
 0x296   : > { %v1051_v5 = vpop.permute.xlu0 %1050 }
 0x297   : > { %v1072_v8 = vsel %vm1021_vm7, %v1051_v5, %v1063_v1  ;;  %v1075_v5 = vmul.f32 %v986_v18, %v3840_v52 }
 0x298   : > { %v1080_v11 = vmul.f32 %v1072_v8, %v3857_v10 }
 0x29a   : > { %v1084_v17 = vadd.f32 %v1080_v11, %v1076_v14  ;;  %v1027_v14 = vmul.f32 %v986_v18, %v3838_v51 }
 0x29c   : > { %v1065_v7 = vpop.permute.xlu1 %1064  ;;  %v1092_v29 = vpack.c.bf16 %v1084_v17, %v1084_v17  ;;  %v998_v48 = vpop.permute.xlu2 %997 }
 0x29e   : > { %v1016_v23 = vpop.permute.xlu0 %1015  ;;  %v1132_v36 = vunpack.c.l.b16 %v1092_v29  ;;  %v2950_v29 = vld [vmem:[%s700_s22] ss:$0 sm:$0xff] }
 0x2a4   : > { %v1053_v16 = vpop.permute.xlu1 %1052  ;;  %v1012_v62 = vpop.permute.xlu2 %1011 }
 0x2a5   : > { %v1073_v21 = vsel %vm1021_vm7, %v1053_v16, %v1065_v7 }
 0x2a6   : > { %v1081_v24 = vmul.f32 %v1073_v21, %v988_v15  ;;  %v1059_v44 = vpop.permute.xlu0 %1058 }
 0x2a8   : > { %v1085_v28 = vadd.f32 %v1081_v24, %v1077_v22 }
 0x2aa   : > { %v1093_v32 = vpack.c.bf16 %v1085_v28, %v1085_v28 }
 0x2ac   : > { %v1004_v35 = vpop.permute.xlu1 %1003  ;;  %v1133_v37 = vunpack.c.l.b16 %v1093_v32 }
 0x2ad   : > { %v1025_v38 = vsel %vm1021_vm7, %v1004_v35, %v1016_v23  ;;  %v1026_v23 = vmul.f32 %v3860_v12, %v3830_v49 }
 0x2ae   : > { %v1033_v41 = vmul.f32 %v1025_v38, %v988_v15  ;;  %v1134_v42 = vpack.c.b16 %v1133_v37, %v1132_v36  ;;  %v1000_v61 = vpop.permute.xlu0 %999 }
 0x2af   : > { %v1023_v1 = vsel %vm1021_vm7, %v1000_v61, %v1012_v62 }
 0x2b0   : > { %v1037_v45 = vadd.f32 %v1033_v41, %v1029_v40  ;;  %v1139_v46 = vsel %vm1104_vm8, %v1134_v42, 0  ;;  %v1031_v8 = vmul.f32 %v1023_v1, %v988_v15 }
 0x2b1   : > { %1148 = vmatpush.bf16.xpose.msra.mxu3 %v1139_v46 }
 0x2b2   : > { %v1089_v53 = vpack.c.bf16 %v1037_v45, %v1037_v45  ;;  %v1035_v17 = vadd.f32 %v1031_v8, %v1027_v14 }
 0x2b4   : > { %v1128_v55 = vunpack.c.l.b16 %v1089_v53  ;;  %v1047_v56 = vpop.permute.xlu1 %1046  ;;  %v1087_v26 = vpack.c.bf16 %v1035_v17, %v1035_v17 }
 0x2b5   : > { %v1070_v57 = vsel %vm1021_vm7, %v1047_v56, %v1059_v44 }
 0x2b6   : > { %v1129_v59 = vpack.c.b16 %v1128_v55, %v1127_v54  ;;  %v1078_v58 = vmul.f32 %v1070_v57, %v3857_v10  ;;  %v1097_v18 = vunpack.c.l.b16 %v1087_v26 }
 0x2b8   : > { %2407 = vmatmul.msk.bf16.vlgmr.msra.gmra.mxu3 %vm1104_vm8, %v1129_v59  ;;  %v1082_v63 = vadd.f32 %v1078_v58, %v1074_v60 }
 0x2b9   : > { %1241 = vmatpush.bf16.msrb.mxu3 %v1229_v47 }
 0x2ba   : > { %v1090_v11 = vpack.c.bf16 %v1082_v63, %v1082_v63 }
 0x2bc   : > { %v1061_v0 = vpop.permute.xlu1 %1060  ;;  %v1101_v50 = vunpack.c.l.b16 %v1090_v11 }
 0x2bd   : > { %v1071_v3 = vsel %vm1021_vm7, %v1049_v27, %v1061_v0 }
 0x2be   : > { %v1079_v7 = vmul.f32 %v1071_v3, %v988_v15 }
 0x2c0   : > { %v1083_v9 = vadd.f32 %v1079_v7, %v1075_v5 }
 0x2c2   : > { %v1091_v16 = vpack.c.bf16 %v1083_v9, %v1083_v9 }
 0x2c4   : > { %v1010_v20 = vpop.permute.xlu1 %1009  ;;  %v1102_v21 = vunpack.c.l.b16 %v1091_v16 }
 0x2c5   : > { %v1022_v22 = vsel %vm1021_vm7, %v998_v48, %v1010_v20 }
 0x2c6   : > { %v1030_v24 = vmul.f32 %v1022_v22, %v3857_v10  ;;  %v1103_v52 = vpack.c.b16 %v1102_v21, %v1101_v50 }
 0x2c8   : > { %v1034_v15 = vadd.f32 %v1030_v24, %v1026_v23  ;;  %v1109_v25 = vsel %vm1104_vm8, %v1103_v52, 0 }
 0x2c9   : > { %1118 = vmatpush.bf16.xpose.msrb.mxu0 %v1109_v25 }
 0x2ca   : > { %v1086_v51 = vpack.c.bf16 %v1034_v15, %v1034_v15 }
 0x2cc   : > { %v1096_v27 = vunpack.c.l.b16 %v1086_v51 }
 0x2ce   : > { %v1098_v28 = vpack.c.b16 %v1097_v18, %v1096_v27 }
 0x2d0   : > { %2406 = vmatmul.msk.bf16.vlgmr.msrb.gmra.mxu0 %vm1104_vm8, %v1098_v28 }
 0x33b   : > { %v1150_v49 = vpop.f32.mrf.mxu3 }
 0x33c   : > { %v1157_v12 = vmul.f32 0.125, %v1150_v49 }
 0x33e   : > { %v1165_v10 = vadd.f32 %v2950_v29, %v1157_v12 }
 0x340   : > { %v1174_v30 = vsel %vm1167_vm9, %v1165_v10, -inf }
 0x341   : > { %1175 = vmax.xlane.f32.xlu0 %v1174_v30 }
 0x343   : > { %v1152_v31 = vpop.f32.mrf.mxu3 }
 0x344   : > { %v1158_v32 = vmul.f32 0.125, %v1152_v31 }
 0x346   : > { %v1166_v33 = vadd.f32 %v2950_v29, %v1158_v32 }
 0x348   : > { %v1177_v34 = vsel %vm1167_vm9, %v1166_v33, -inf }
 0x349   : > { %1178 = vmax.xlane.f32.xlu1 %v1177_v34 }
 0x34d   : > { %v1120_v35 = vpop.f32.mrf.mxu0 }
 0x34e   : > { %v1155_v36 = vmul.f32 0.125, %v1120_v35 }
 0x350   : > { %v1163_v37 = vadd.f32 %v2950_v29, %v1155_v36 }
 0x352   : > { %v1168_v38 = vsel %vm1167_vm9, %v1163_v37, -inf }
 0x353   : > { %1169 = vmax.xlane.f32.xlu2 %v1168_v38 }
 0x355   : > { %v1122_v39 = vpop.f32.mrf.mxu0 }
 0x356   : > { %v1156_v40 = vmul.f32 0.125, %v1122_v39 }
 0x358   : > { %v1164_v41 = vadd.f32 %v2950_v29, %v1156_v40 }
 0x35a   : > { %v1171_v42 = vsel %vm1167_vm9, %v1164_v41, -inf }
 0x35b   : > { %1172 = vmax.xlane.f32.xlu0 %v1171_v42  ;;  %v2715_v42 = vld [vmem:[%s3711_s27 + $0x30] sm:$0xff] }
 0x36f   : > { %2945 = vrot.lane.b32.xlu0 %v2944_v43, %s3391_s7  ;;  %v2714_v43 = vld [vmem:[%s3711_s27 + $0x28] sm:$0xff] }
 0x3b4   : > { %v1176_v44 = vpop.xlane.xlu0 %1175 }
 0x3b5   : > { %v1182_v45 = vsub.f32 %v1165_v10, %v1176_v44  ;;  %v2713_v44 = vld [vmem:[%s3711_s27 + $0x20] sm:$0xff] }
 0x3b7   : > { %v1188_v46 = vmul.f32 1.442695, %v1182_v45  ;;  %v2712_v45 = vld [vmem:[%s3711_s27 + $0x18] sm:$0xff] }
 0x3b9   : > { %2958 = vpow2.f32 %v1188_v46  ;;  %v2711_v46 = vld [vmem:[%s3711_s27 + $0x10] sm:$0xff] }
 0x3bc   : > { %v1179_v47 = vpop.xlane.xlu1 %1178 }
 0x3bd   : > { %v1183_v48 = vsub.f32 %v1166_v33, %v1179_v47 }
 0x3bf   : > { %v2959_v53 = vpop.eup %2958  ;;  %v1190_v54 = vmul.f32 1.442695, %v1183_v48  ;;  %v2710_v48 = vld [vmem:[%s3711_s27 + $0x8] sm:$0xff] }
 0x3c0   : > { %v1198_v55 = vsel %vm1167_vm9, %v2959_v53, 0.0 }
 0x3c1   : > { %2960 = vpow2.f32 %v1190_v54  ;;  %1199 = vadd.xlane.f32.xlu2 %v1198_v55 }
 0x3c6   : > { %v1170_v56 = vpop.xlane.xlu2 %1169 }
 0x3c7   : > { %v2961_v57 = vpop.eup %2960  ;;  %v1180_v59 = vsub.f32 %v1163_v37, %v1170_v56 }
 0x3c8   : > { %v1201_v58 = vsel %vm1167_vm9, %v2961_v57, 0.0 }
 0x3c9   : > { %v1184_v6 = vmul.f32 1.442695, %v1180_v59  ;;  %1202 = vadd.xlane.f32.xlu1 %v1201_v58 }
 0x3cb   : > { %2962 = vpow2.f32 %v1184_v6 }
 0x3ce   : > { %v1173_v19 = vpop.xlane.xlu0 %1172 }
 0x3cf   : > { %v1181_v60 = vsub.f32 %v1164_v41, %v1173_v19  ;;  %v2716_v41 = vld [vmem:[%s3711_s27 + $0x38] sm:$0xff] }
 0x3d0   : > { %1366 = vmatpush.bf16.msrb.mxu1 %v2716_v41  ;;  %v2522_v41 = vld [vmem:[%s3713_s1 + $0x98] sm:$0xf0] }
 0x3d1   : > { %v2963_v61 = vpop.eup %2962  ;;  %v1186_v62 = vmul.f32 1.442695, %v1181_v60  ;;  %v2560_v60 = vld [vmem:[%s3713_s1 + $0xe0] sm:$0xf] }
 0x3d2   : > { %v1192_v63 = vsel %vm1167_vm9, %v2963_v61, 0.0 }
 0x3d3   : > { %2964 = vpow2.f32 %v1186_v62  ;;  %1193 = vadd.xlane.f32.xlu2 %v1192_v63  ;;  %v2562_v63 = vld [vmem:[%s3713_s1 + $0xf0] sm:$0xf0] }
 0x3d4   : > { %1367 = vmatpush.bf16.msrb.mxu1 %v2715_v42 }
 0x3d8   : > { %1368 = vmatpush.bf16.msrb.mxu1 %v2714_v43  ;;  %v2496_v43 = vld [vmem:[%s3713_s1 + $0x60] sm:$0xf] }
 0x3d9   : > { %v2965_v0 = vpop.eup %2964 }
 0x3da   : > { %v1195_v1 = vsel %vm1167_vm9, %v2965_v0, 0.0 }
 0x3db   : > { %1196 = vadd.xlane.f32.xlu1 %v1195_v1  ;;  %v2748_v1 = vld [vmem:[%s3713_s1 + $0xf4] sm:$0xf0] }
 0x3dc   : > { %1369 = vmatpush.bf16.msrb.mxu1 %v2713_v44  ;;  %v2731_v44 = vld [vmem:[%s3713_s1 + $0x6c] sm:$0xf0] }
 0x3e0   : > { %1370 = vmatpush.bf16.msrb.mxu1 %v2712_v45  ;;  %v2729_v45 = vld [vmem:[%s3713_s1 + $0x64] sm:$0xf] }
 0x3e1   : > { %v2946_v3 = vpop.permute.xlu0 %2945 }
 0x3e2   : > { %v2948_v5 = vunpack.i.h.bf16 %v2946_v3  ;;  %v2947_v7 = vunpack.i.l.bf16 %v2946_v3 }
 0x3e4   : > { %v1219_v8 = vpack.c.bf16 %v2948_v5, %v2948_v5  ;;  %v1218_v9 = vpack.c.bf16 %v2947_v7, %v2947_v7  ;;  %1371 = vmatpush.bf16.msrb.mxu1 %v2711_v46  ;;  %v2746_v5 = vld [vmem:[%s3713_s1 + $0xec] sm:$0xf]  ;;  %v2570_v7 = vld [vmem:[%s3713_s1 + $0xf8] sm:$0xf0]  ;;  %v2497_v46 = vor.u32 %v2731_v44, %v2496_v43 }
 0x3e6   : > { %v1256_v11 = vunpack.c.l.b16 %v1219_v8  ;;  %v1255_v14 = vunpack.c.l.b16 %v1218_v9  ;;  %v2573_v8 = vor.u32 %v2746_v5, %v2570_v7  ;;  %v2544_v9 = vld [vmem:[%s3713_s1 + $0xc0] sm:$0xf]  ;;  %v2490_v5 = vld [vmem:[%s3713_s1 + $0x58] sm:$0xf0] }
 0x3e8   : > { %v1257_v16 = vpack.c.b16 %v1256_v11, %v1255_v14  ;;  %1372 = vmatpush.bf16.msrb.mxu1 %v2710_v48  ;;  %v2743_v11 = vld [vmem:[%s3713_s1 + $0xcc] sm:$0xf0]  ;;  %v2741_v14 = vld [vmem:[%s3713_s1 + $0xc4] sm:$0xf]  ;;  %v2504_v48 = vld [vmem:[%s3713_s1 + $0x68] sm:$0xf] }
 0x3ea   : > { %1269 = vmatpush.bf16.msra.mxu0 %v1257_v16  ;;  %v2545_v16 = vor.u32 %v2743_v11, %v2544_v9  ;;  %v2723_v9 = vld [vmem:[%s3713_s1 + $0x2c] sm:$0xf0]  ;;  %v2721_v11 = vld [vmem:[%s3713_s1 + $0x24] sm:$0xf] }
 0x434   : > { %v1200_v17 = vpop.xlane.xlu2 %1199 }
 0x435   : > { %2966 = vrcp.f32 %v1200_v17  ;;  %v2546_v17 = vld [vmem:[%s3713_s1 + $0xd0] sm:$0xf0] }
 0x43b   : > { %v2967_v50 = vpop.eup %2966 }
 0x43c   : > { %v1203_v20 = vpop.xlane.xlu1 %1202  ;;  %v1210_v21 = vmul.f32 %v2967_v50, %v2959_v53  ;;  %v2709_v53 = vld [vmem:[%s3711_s27] sm:$0xff]  ;;  %v2744_v50 = vld [vmem:[%s3713_s1 + $0xd4] sm:$0xf0] }
 0x43d   : > { %2968 = vrcp.f32 %v1203_v20  ;;  %1373 = vmatpush.bf16.msrb.mxu1 %v2709_v53  ;;  %v2552_v20 = vld [vmem:[%s3713_s1 + $0xc8] sm:$0xf]  ;;  %v2732_v53 = vld [vmem:[%s3713_s1 + $0x74] sm:$0xf0] }
 0x43e   : > { %v1214_v23 = vpack.c.bf16 %v1210_v21, %v1210_v21  ;;  %v2549_v21 = vor.u32 %v2741_v14, %v2546_v17  ;;  %v2472_v17 = vld [vmem:[%s3713_s1 + $0x28] sm:$0xf] }
 0x440   : > { %v1250_v15 = vunpack.c.l.b16 %v1214_v23  ;;  %v2742_v23 = vld [vmem:[%s3713_s1 + $0xcc] sm:$0xf] }
 0x441   : > { %1655 = vmatpush.bf16.msra.mxu1 %v2573_v8  ;;  %v2464_v8 = vld [vmem:[%s3713_s1 + $0x20] sm:$0xf] }
 0x442   : > { %v2465_v14 = vor.u32 %v2723_v9, %v2464_v8 }
 0x443   : > { %v2969_v22 = vpop.eup %2968 }
 0x444   : > { %v1211_v24 = vmul.f32 %v2969_v22, %v2961_v57  ;;  %v2553_v22 = vor.u32 %v2744_v50, %v2552_v20  ;;  %v2724_v20 = vld [vmem:[%s3713_s1 + $0x34] sm:$0xf0] }
 0x446   : > { %v1215_v52 = vpack.c.bf16 %v1211_v24, %v1211_v24  ;;  %v1194_v26 = vpop.xlane.xlu2 %1193  ;;  %v2554_v24 = vld [vmem:[%s3713_s1 + $0xd8] sm:$0xf0] }
 0x447   : > { %2970 = vrcp.f32 %v1194_v26  ;;  %v2528_v26 = vld [vmem:[%s3713_s1 + $0xa0] sm:$0xf] }
 0x448   : > { %v1251_v25 = vunpack.c.l.b16 %v1215_v52  ;;  %v2557_v52 = vor.u32 %v2742_v23, %v2554_v24  ;;  %v2474_v23 = vld [vmem:[%s3713_s1 + $0x38] sm:$0xf0] }
 0x44a   : > { %v1252_v51 = vpack.c.b16 %v1251_v25, %v1250_v15  ;;  %v2739_v15 = vld [vmem:[%s3713_s1 + $0xac] sm:$0xf0]  ;;  %v2737_v25 = vld [vmem:[%s3713_s1 + $0xa4] sm:$0xf]  ;;  %1656 = vmatpush.bf16.msra.mxu1 %v2557_v52  ;;  %v2448_v52 = vld [vmem:[%s3713_s1] sm:$0xf] }
 0x44c   : > { %2409 = vmatmul.msk.bf16.vlgmr.msra.gmra.mxu0 %vm1167_vm9, %v1252_v51  ;;  %v2529_v51 = vor.u32 %v2739_v15, %v2528_v26  ;;  %v2719_v26 = vld [vmem:[%s3713_s1 + $0xc] sm:$0xf0]  ;;  %v2717_v15 = vld [vmem:[%s3713_s1 + $0x4] sm:$0xf] }
 0x44d   : > { %v2971_v27 = vpop.eup %2970 }
 0x44e   : > { %v1197_v18 = vpop.xlane.xlu1 %1196  ;;  %v1208_v28 = vmul.f32 %v2971_v27, %v2963_v61  ;;  %v2747_v61 = vld [vmem:[%s3713_s1 + $0xec] sm:$0xf0]  ;;  %v2536_v27 = vld [vmem:[%s3713_s1 + $0xa8] sm:$0xf] }
 0x44f   : > { %2972 = vrcp.f32 %v1197_v18  ;;  %v2561_v62 = vor.u32 %v2747_v61, %v2560_v60  ;;  %v2530_v18 = vld [vmem:[%s3713_s1 + $0xb0] sm:$0xf0]  ;;  %v2727_v60 = vld [vmem:[%s3713_s1 + $0x4c] sm:$0xf0]  ;;  %v2725_v61 = vld [vmem:[%s3713_s1 + $0x44] sm:$0xf] }
 0x450   : > { %v1212_v49 = vpack.c.bf16 %v1208_v28, %v1208_v28  ;;  %v2740_v28 = vld [vmem:[%s3713_s1 + $0xb4] sm:$0xf0] }
 0x451   : > { %1613 = vmatpush.bf16.msrb.mxu2 %v2561_v62  ;;  %v2482_v62 = vld [vmem:[%s3713_s1 + $0x50] sm:$0xf0] }
 0x452   : > { %v1222_v30 = vunpack.c.l.b16 %v1212_v49  ;;  %v2537_v49 = vor.u32 %v2740_v28, %v2536_v27  ;;  %v2456_v27 = vld [vmem:[%s3713_s1 + $0x8] sm:$0xf]  ;;  %v2720_v28 = vld [vmem:[%s3713_s1 + $0x14] sm:$0xf0] }
 0x455   : > { %v2973_v29 = vpop.eup %2972  ;;  %1614 = vmatpush.bf16.msrb.mxu2 %v2545_v16  ;;  %v2466_v16 = vld [vmem:[%s3713_s1 + $0x30] sm:$0xf0] }
 0x456   : > { %v1209_v12 = vmul.f32 %v2973_v29, %v2965_v0  ;;  %v2568_v0 = vld [vmem:[%s3713_s1 + $0xe8] sm:$0xf]  ;;  %v2533_v29 = vor.u32 %v2737_v25, %v2530_v18  ;;  %v2469_v50 = vor.u32 %v2721_v11, %v2466_v16  ;;  %v2450_v18 = vld [vmem:[%s3713_s1 + $0x10] sm:$0xf0] }
 0x457   : > { %v2759_v16 = vld [vmem:[%s3719_s21 + $0x50] sm:$0xff] }
 0x458   : > { %v1213_v10 = vpack.c.bf16 %v1209_v12, %v1209_v12  ;;  %v2738_v12 = vld [vmem:[%s3713_s1 + $0xac] sm:$0xf] }
 0x459   : > { %1615 = vmatpush.bf16.msrb.mxu2 %v2529_v51  ;;  %v2449_v51 = vor.u32 %v2719_v26, %v2448_v52 }
 0x45a   : > { %v1223_v31 = vunpack.c.l.b16 %v1213_v10  ;;  %v2538_v10 = vld [vmem:[%s3713_s1 + $0xb8] sm:$0xf0] }
 0x45c   : > { %v1224_v32 = vpack.c.b16 %v1223_v31, %v1222_v30  ;;  %v2541_v30 = vor.u32 %v2738_v12, %v2538_v10  ;;  %v2512_v31 = vld [vmem:[%s3713_s1 + $0x80] sm:$0xf]  ;;  %v2457_v12 = vor.u32 %v2720_v28, %v2456_v27  ;;  %v2718_v10 = vld [vmem:[%s3713_s1 + $0xc] sm:$0xf] }
 0x45e   : > { %2408 = vmatmul.msk.bf16.vlgmr.msrb.gmra.mxu3 %vm1167_vm9, %v1224_v32  ;;  %v2735_v32 = vld [vmem:[%s3713_s1 + $0x8c] sm:$0xf0]  ;;  %1657 = vmatpush.bf16.msra.mxu1 %v2541_v30  ;;  %v2458_v30 = vld [vmem:[%s3713_s1 + $0x18] sm:$0xf0] }
 0x4c9   : > { %v1271_v33 = vpop.f32.mrf.mxu0 }
 0x4ca   : > { %v1281_v34 = vpack.c.bf16 %v1271_v33, %v1271_v33  ;;  %v2733_v33 = vld [vmem:[%s3713_s1 + $0x84] sm:$0xf] }
 0x4cc   : > { %1285 = vrot.lane.b32.xlu2 %v1281_v34, %s3391_s7  ;;  %v2513_v34 = vor.u32 %v2735_v32, %v2512_v31  ;;  %v2461_v31 = vor.u32 %v2718_v10, %v2458_v30 }
 0x4ce   : > { %1616 = vmatpush.bf16.msrb.mxu2 %v2513_v34 }
 0x4d1   : > { %v1273_v35 = vpop.f32.mrf.mxu0 }
 0x4d2   : > { %v1282_v36 = vpack.c.bf16 %v1273_v35, %v1273_v35  ;;  %v2514_v35 = vld [vmem:[%s3713_s1 + $0x90] sm:$0xf0]  ;;  %1617 = vmatpush.bf16.msrb.mxu2 %v2497_v46 }
 0x4d4   : > { %1287 = vrot.lane.b32.xlu1 %v1282_v36, %s3391_s7  ;;  %v2520_v36 = vld [vmem:[%s3713_s1 + $0x88] sm:$0xf] }
 0x4e1   : > { %v1243_v37 = vpop.f32.mrf.mxu3 }
 0x4e2   : > { %v1276_v38 = vpack.c.bf16 %v1243_v37, %v1243_v37  ;;  %v2736_v37 = vld [vmem:[%s3713_s1 + $0x94] sm:$0xf0] }
 0x4e4   : > { %1279 = vst.msk [vmem:[#allocation3] sm:$0xf] %vm1278_vm10, %v1276_v38  ;;  %v2517_v38 = vor.u32 %v2733_v33, %v2514_v35 }
 0x4e9   : > { %v1245_v39 = vpop.f32.mrf.mxu3 }
 0x4ea   : > { %v1277_v40 = vpack.c.bf16 %v1245_v39, %v1245_v39  ;;  %v2521_v39 = vor.u32 %v2736_v37, %v2520_v36 }
 0x4ec   : > { %1280 = vst.msk [vmem:[#allocation3 + $0x4] sm:$0xf] %vm1278_vm10, %v1277_v40  ;;  %v2734_v40 = vld [vmem:[%s3713_s1 + $0x8c] sm:$0xf] }
 0x4ed   : > { %v2525_v42 = vor.u32 %v2734_v40, %v2522_v41 }
 0x4ef   : > { %1658 = vmatpush.bf16.msra.mxu1 %v2525_v42 }
 0x526   : > { %v1286_v47 = vpop.permute.xlu2 %1285 }
 0x527   : > { %1292 = vst.msk [vmem:[#allocation3] sm:$0xf] %vm1291_vm11, %v1286_v47  ;;  %v2498_v47 = vld [vmem:[%s3713_s1 + $0x70] sm:$0xf0] }
 0x546   : > { %v1288_v54 = vpop.permute.xlu1 %1287 }
 0x547   : > { %1293 = vst.msk [vmem:[#allocation3 + $0x4] sm:$0xf] %vm1291_vm11, %v1288_v54  ;;  %v2501_v54 = vor.u32 %v2729_v45, %v2498_v47 }
 0x54e   : > { %v2708_v55 = vld [vmem:[#allocation3] sm:$0xff] }
 0x54f   : > { %1374 = vmatmul.bf16.vlgmr.msrb.gmra.mxu1 %v2708_v55  ;;  %v2505_v55 = vor.u32 %v2732_v53, %v2504_v48 }
 0x5cc   : > { %v1375_v56 = vpop.f32.mrf.mxu1 }
 0x5cd   : > { %v3919_v57 = vadd.f32 %v1375_v56, %v3756_v2  ;;  %v2745_v2 = vld [vmem:[%s3713_s1 + $0xe4] sm:$0xf]  ;;  %v2730_v56 = vld [vmem:[%s3713_s1 + $0x6c] sm:$0xf] }
 0x5ce   : > { %v2565_v3 = vor.u32 %v2745_v2, %v2562_v63  ;;  %v2488_v63 = vld [vmem:[%s3713_s1 + $0x48] sm:$0xf] }
 0x5cf   : > { %v1383_v59 = vmul.f32 %v3919_v57, %v3919_v57 }
 0x5d0   : > { %1627 = vmatpush.bf16.msra.mxu3 %v2565_v3 }
 0x5d1   : > { %1385 = vadd.xlane.f32.xlu0 %v1383_v59  ;;  %v2506_v59 = vld [vmem:[%s3713_s1 + $0x78] sm:$0xf0] }
 0x5d4   : > { %v1377_v58 = vpop.f32.mrf.mxu1  ;;  %1628 = vmatpush.bf16.msra.mxu3 %v2549_v21  ;;  %v2473_v21 = vor.u32 %v2724_v20, %v2472_v17  ;;  %v2750_v17 = vld [vmem:[%s3719_s21 + $0x8] sm:$0xff] }
 0x5d5   : > { %v3924_v6 = vadd.f32 %v1377_v58, %v3760_v4  ;;  %v2569_v4 = vor.u32 %v2748_v1, %v2568_v0  ;;  %v2509_v58 = vor.u32 %v2730_v56, %v2506_v59  ;;  %v2728_v0 = vld [vmem:[%s3713_s1 + $0x54] sm:$0xf0]  ;;  %v2485_v1 = vor.u32 %v2725_v61, %v2482_v62  ;;  %v2763_v62 = vld [vmem:[%s3719_s21 + $0x70] sm:$0xff]  ;;  %v2758_v20 = vld [vmem:[%s3719_s21 + $0x48] sm:$0xff] }
 0x5d6   : > { %v2489_v3 = vor.u32 %v2728_v0, %v2488_v63  ;;  %v2764_v61 = vld [vmem:[%s3719_s21 + $0x78] sm:$0xff]  ;;  %v2754_v63 = vld [vmem:[%s3719_s21 + $0x28] sm:$0xff] }
 0x5d7   : > { %v1384_v19 = vmul.f32 %v3924_v6, %v3924_v6  ;;  %1641 = vmatpush.bf16.msrb.mxu0 %v2569_v4  ;;  %1659 = vmatpush.bf16.msra.mxu1 %v2509_v58  ;;  %v2726_v4 = vld [vmem:[%s3713_s1 + $0x4c] sm:$0xf] }
 0x5d8   : > { %1629 = vmatpush.bf16.msra.mxu3 %v2533_v29  ;;  %v2493_v7 = vor.u32 %v2726_v4, %v2490_v5  ;;  %v2762_v0 = vld [vmem:[%s3719_s21 + $0x68] sm:$0xff]  ;;  %v2752_v4 = vld [vmem:[%s3719_s21 + $0x18] sm:$0xff] }
 0x5d9   : > { %1387 = vadd.xlane.f32.xlu2 %v1384_v19  ;;  %v2480_v19 = vld [vmem:[%s3713_s1 + $0x40] sm:$0xf]  ;;  %v2760_v5 = vld [vmem:[%s3719_s21 + $0x58] sm:$0xff] }
 0x5da   : > { %v2481_v2 = vor.u32 %v2727_v60, %v2480_v19  ;;  %v2756_v60 = vld [vmem:[%s3719_s21 + $0x38] sm:$0xff] }
 0x5db   : > { %1642 = vmatpush.bf16.msrb.mxu0 %v2553_v22  ;;  %1660 = vmatpush.bf16.msra.mxu1 %v2493_v7  ;;  %v2722_v22 = vld [vmem:[%s3713_s1 + $0x2c] sm:$0xf] }
 0x5dc   : > { %1630 = vmatpush.bf16.msra.mxu3 %v2517_v38  ;;  %1618 = vmatpush.bf16.msrb.mxu2 %v2481_v2  ;;  %v2477_v24 = vor.u32 %v2722_v22, %v2474_v23  ;;  %v2755_v2 = vld [vmem:[%s3719_s21 + $0x30] sm:$0xff] }
 0x5df   : > { %1643 = vmatpush.bf16.msrb.mxu0 %v2537_v49  ;;  %1661 = vmatpush.bf16.msra.mxu1 %v2477_v24  ;;  %v2453_v49 = vor.u32 %v2717_v15, %v2450_v18  ;;  %v2749_v15 = vld [vmem:[%s3719_s21] sm:$0xff] }
 0x5e0   : > { %1631 = vmatpush.bf16.msra.mxu3 %v2501_v54  ;;  %1619 = vmatpush.bf16.msrb.mxu2 %v2465_v14  ;;  %v2951_v54 = vld [vmem:[%s697_s10] ss:$0 sm:$0xff]  ;;  %v2751_v14 = vld [vmem:[%s3719_s21 + $0x10] sm:$0xff] }
 0x5e3   : > { %1644 = vmatpush.bf16.msrb.mxu0 %v2521_v39  ;;  %1662 = vmatpush.bf16.msra.mxu1 %v2461_v31 }
 0x5e4   : > { %1632 = vmatpush.bf16.msra.mxu3 %v2485_v1  ;;  %1620 = vmatpush.bf16.msrb.mxu2 %v2449_v51  ;;  %v2753_v1 = vld [vmem:[%s3719_s21 + $0x20] sm:$0xff] }
 0x5e7   : > { %1645 = vmatpush.bf16.msrb.mxu0 %v2505_v55 }
 0x5e8   : > { %1633 = vmatpush.bf16.msra.mxu3 %v2469_v50  ;;  %1883 = vmatpush.bf16.msra.mxu2 %v2756_v60 }
 0x5eb   : > { %1646 = vmatpush.bf16.msrb.mxu0 %v2489_v3  ;;  %v2761_v3 = vld [vmem:[%s3719_s21 + $0x60] sm:$0xff] }
 0x5ec   : > { %1634 = vmatpush.bf16.msra.mxu3 %v2453_v49  ;;  %1884 = vmatpush.bf16.msra.mxu2 %v2755_v2 }
 0x5ef   : > { %1647 = vmatpush.bf16.msrb.mxu0 %v2473_v21 }
 0x5f0   : > { %1897 = vmatpush.bf16.msrb.mxu3 %v2764_v61  ;;  %1885 = vmatpush.bf16.msra.mxu2 %v2754_v63 }
 0x5f3   : > { %1648 = vmatpush.bf16.msrb.mxu0 %v2457_v12 }
 0x5f4   : > { %1898 = vmatpush.bf16.msrb.mxu3 %v2763_v62  ;;  %1886 = vmatpush.bf16.msra.mxu2 %v2753_v1 }
 0x5f8   : > { %1899 = vmatpush.bf16.msrb.mxu3 %v2762_v0  ;;  %1887 = vmatpush.bf16.msra.mxu2 %v2752_v4 }
 0x5fc   : > { %1900 = vmatpush.bf16.msrb.mxu3 %v2761_v3  ;;  %1888 = vmatpush.bf16.msra.mxu2 %v2751_v14 }
 0x600   : > { %1901 = vmatpush.bf16.msrb.mxu3 %v2760_v5  ;;  %1889 = vmatpush.bf16.msra.mxu2 %v2750_v17 }
 0x604   : > { %1902 = vmatpush.bf16.msrb.mxu3 %v2759_v16  ;;  %1890 = vmatpush.bf16.msra.mxu2 %v2749_v15 }
 0x608   : > { %1903 = vmatpush.bf16.msrb.mxu3 %v2758_v20 }
 0x644   : > { %v1386_v25 = vpop.xlane.xlu0 %1385 }
 0x645   : > { %v1389_v29 = vmul.f32 %v1386_v25, %v3813_v13  ;;  %v2757_v25 = vld [vmem:[%s3719_s21 + $0x40] sm:$0xff]  ;;  %s4212_s21 = sld [smem:[#allocation28_spill]] }
 0x646   : > { %1904 = vmatpush.bf16.msrb.mxu3 %v2757_v25 }
 0x647   : > { %v1391_v32 = vadd.f32 1e-06, %v1389_v29 }
 0x649   : > { %2974 = vrsqrt.f32 %v1391_v32  ;;  %vm1399_vm13 = vweird.f32 %v1391_v32 }
 0x64b   : > { %p2642_p12 = scmp.ne.s32.totalorder %s4212_s21, 1 }
 0x64c   : > { %v1388_v33 = vpop.xlane.xlu2 %1387  ;;  %s4213_s8 = sld [smem:[#allocation49_spill]] (!%p2642_p12) }
 0x64d   : > { %v1390_v34 = vmul.f32 %v1388_v33, %v3813_v13 }
 0x64f   : > { %v2975_v35 = vpop.eup %2974  ;;  %v1392_v36 = vadd.f32 1e-06, %v1390_v34 }
 0x650   : > { %v1394_v37 = vmul.f32 %v2975_v35, %v1391_v32  ;;  %vm1400_vm12 = vweird.f32 %v2975_v35 }
 0x651   : > { %2976 = vrsqrt.f32 %v1392_v36  ;;  %vm1401_vm14 = vmor %vm1399_vm13, %vm1400_vm12  ;;  %vm1409_vm0 = vweird.f32 %v1392_v36 }
 0x652   : > { %v1395_v38 = vmul.f32 %v2975_v35, %v1394_v37 }
 0x654   : > { %v1396_v39 = vmul.f32 0.5, %v1395_v38 }
 0x656   : > { %v1397_v40 = vsub.f32 1.5, %v1396_v39 }
 0x657   : > { %v2977_v41 = vpop.eup %2976 }
 0x658   : > { %v1404_v42 = vmul.f32 %v2977_v41, %v1392_v36  ;;  %v1398_v43 = vmul.f32 %v2975_v35, %v1397_v40  ;;  %vm1410_vm15 = vweird.f32 %v2977_v41 }
 0x659   : > { %vm1411_vm1 = vmor %vm1409_vm0, %vm1410_vm15 }
 0x65a   : > { %v1405_v44 = vmul.f32 %v2977_v41, %v1404_v42  ;;  %v1402_v46 = vsel %vm1401_vm14, %v2975_v35, %v1398_v43 }
 0x65b   : > { %v1413_v53 = vmul.f32 %v1402_v46, %v3919_v57 }
 0x65c   : > { %v1406_v45 = vmul.f32 0.5, %v1405_v44 }
 0x65d   : > { %v1418_v59 = vmul.f32 %v2951_v54, %v1413_v53 }
 0x65e   : > { %v1407_v47 = vsub.f32 1.5, %v1406_v45 }
 0x660   : > { %v1408_v48 = vmul.f32 %v2977_v41, %v1407_v47 }
 0x662   : > { %v1412_v55 = vsel %vm1411_vm1, %v2977_v41, %v1408_v48 }
 0x663   : > { %v1414_v56 = vmul.f32 %v1412_v55, %v3924_v6 }
 0x665   : > { %v1419_v58 = vmul.f32 %v2951_v54, %v1414_v56 }
 0x667   : > { %v1420_v19 = vpack.c.bf16 %v1419_v58, %v1418_v59 }
 0x669   : > { %1621 = vmatmul.bf16.vlgmr.msrb.gmra.mxu2 %v1420_v19  ;;  %1635 = vmatmul.bf16.vlgmr.msra.gmra.mxu3 %v1420_v19 }
 0x66a   : > { %1649 = vmatmul.bf16.vlgmr.msrb.gmra.mxu0 %v1420_v19  ;;  %1663 = vmatmul.bf16.vlgmr.msra.gmra.mxu1 %v1420_v19 }
 0x6e7   : > { %v1650_v40 = vpop.f32.mrf.mxu0  ;;  %v1664_v55 = vpop.f32.mrf.mxu1 }
 0x6ec   : > { %v4011_v7 = vpop.f32.mrf.mxu2  ;;  %v4013_v8 = vpop.f32.mrf.mxu3 }
 0x6ed   : > { %v2574_v9 = vmul.f32 -1.442695, %v4011_v7  ;;  %v2575_v11 = vmul.f32 -1.442695, %v4013_v8 }
 0x6ef   : > { %2978 = vpow2.f32 %v2574_v9  ;;  %v1666_v15 = vpop.f32.mrf.mxu1 }
 0x6f0   : > { %2980 = vpow2.f32 %v2575_v11 }
 0x6f4   : > { %v4021_v50 = vpop.f32.mrf.mxu2  ;;  %v4023_v21 = vpop.f32.mrf.mxu3 }
 0x6f5   : > { %v2979_v22 = vpop.eup %2978  ;;  %v2576_v23 = vmul.f32 -1.442695, %v4021_v50  ;;  %v2577_v26 = vmul.f32 -1.442695, %v4023_v21 }
 0x6f6   : > { %v2981_v24 = vpop.eup %2980  ;;  %v1681_v52 = vadd.f32 1.0, %v2979_v22  ;;  %v1652_v22 = vpop.f32.mrf.mxu0 }
 0x6f7   : > { %v1682_v51 = vadd.f32 1.0, %v2981_v24  ;;  %2982 = vpow2.f32 %v2576_v23 }
 0x6f8   : > { %2984 = vrcp.f32 %v1681_v52  ;;  %v1696_v37 = vand.u32 2147483648, %v1681_v52  ;;  %vm1690_vm3 = vweird.f32 %v1681_v52  ;;  %v1694_v38 = vand.u32 2147483647, %v1681_v52 }
 0x6f9   : > { %2986 = vrcp.f32 %v1682_v51  ;;  %v1709_v43 = vand.u32 2147483647, %v1682_v51  ;;  %v1711_v46 = vand.u32 2147483648, %v1682_v51  ;;  %vm1705_vm6 = vweird.f32 %v1682_v51 }
 0x6fa   : > { %2988 = vpow2.f32 %v2577_v26  ;;  %v1697_v48 = vor.u32 1.1754944e-38, %v1696_v37  ;;  %vm1695_vm7 = vcmp.eq.f32.partialorder %v1694_v38, 8.507059e+37 }
 0x6fb   : > { %vm1710_vm10 = vcmp.eq.f32.partialorder %v1709_v43, 8.507059e+37  ;;  %v1712_v2 = vor.u32 1.1754944e-38, %v1711_v46 }
 0x6fd   : > { %v2983_v18 = vpop.eup %2982 }
 0x6fe   : > { %v2985_v27 = vpop.eup %2984  ;;  %v1683_v28 = vadd.f32 1.0, %v2983_v18 }
 0x6ff   : > { %v2987_v29 = vpop.eup %2986  ;;  %v1686_v49 = vmul.f32 %v2985_v27, %v1681_v52  ;;  %vm1691_vm2 = vweird.f32 %v2985_v27 }
 0x700   : > { %v2989_v12 = vpop.eup %2988  ;;  %v1701_v10 = vmul.f32 %v2987_v29, %v1682_v51  ;;  %2990 = vrcp.f32 %v1683_v28  ;;  %vm4029_vm4 = vmor %vm1690_vm3, %vm1691_vm2  ;;  %vm1706_vm5 = vweird.f32 %v2987_v29  ;;  %v1726_v53 = vand.u32 2147483648, %v1683_v28 }
 0x701   : > { %v1687_v30 = vsub.f32 1.0, %v1686_v49  ;;  %v1684_v31 = vadd.f32 1.0, %v2989_v12  ;;  %vm4035_vm8 = vmor %vm1705_vm6, %vm1706_vm5  ;;  %v1724_v58 = vand.u32 2147483647, %v1683_v28  ;;  %vm1720_vm11 = vweird.f32 %v1683_v28 }
 0x702   : > { %v1702_v32 = vsub.f32 1.0, %v1701_v10  ;;  %v1727_v0 = vor.u32 1.1754944e-38, %v1726_v53 }
 0x703   : > { %v1688_v33 = vmul.f32 %v2985_v27, %v1687_v30  ;;  %2992 = vrcp.f32 %v1684_v31  ;;  %v1741_v63 = vand.u32 2147483648, %v1684_v31  ;;  %v1739_v3 = vand.u32 2147483647, %v1684_v31 }
 0x704   : > { %v1703_v34 = vmul.f32 %v2987_v29, %v1702_v32  ;;  %vm1725_vm14 = vcmp.eq.f32.partialorder %v1724_v58, 8.507059e+37  ;;  %vm1735_vm15 = vweird.f32 %v1684_v31 }
 0x705   : > { %v1689_v35 = vadd.f32 %v2985_v27, %v1688_v33  ;;  %v1742_v17 = vor.u32 1.1754944e-38, %v1741_v63  ;;  %vm1740_vm1 = vcmp.eq.f32.partialorder %v1739_v3, 8.507059e+37 }
 0x706   : > { %v2991_v36 = vpop.eup %2990  ;;  %v1704_v42 = vadd.f32 %v2987_v29, %v1703_v34 }
 0x707   : > { %v1716_v39 = vmul.f32 %v2991_v36, %v1683_v28  ;;  %v1693_v45 = vsel %vm4029_vm4, %v2985_v27, %v1689_v35  ;;  %vm1721_vm9 = vweird.f32 %v2991_v36 }
 0x708   : > { %v1698_v19 = vsel %vm1695_vm7, %v1697_v48, %v1693_v45  ;;  %v1708_v60 = vsel %vm4035_vm8, %v2987_v29, %v1704_v42  ;;  %vm1722_vm12 = vmor %vm1720_vm11, %vm1721_vm9 }
 0x709   : > { %v2993_v44 = vpop.eup %2992  ;;  %v1717_v47 = vsub.f32 1.0, %v1716_v39  ;;  %v1745_v4 = vmul.f32 %v1698_v19, %v4011_v7  ;;  %v1713_v5 = vsel %vm1710_vm10, %v1712_v2, %v1708_v60 }
 0x70a   : > { %v1731_v54 = vmul.f32 %v2993_v44, %v1684_v31  ;;  %vm1736_vm13 = vweird.f32 %v2993_v44  ;;  %v1746_v20 = vmul.f32 %v1713_v5, %v4013_v8 }
 0x70b   : > { %v1718_v59 = vmul.f32 %v2991_v36, %v1717_v47  ;;  %vm1737_vm0 = vmor %vm1735_vm15, %vm1736_vm13  ;;  %v1749_v24 = vmul.f32 %v1745_v4, %v1650_v40 }
 0x70c   : > { %v1732_v61 = vsub.f32 1.0, %v1731_v54  ;;  %v1750_v51 = vmul.f32 %v1746_v20, %v1664_v55 }
 0x70d   : > { %v1719_v62 = vadd.f32 %v2991_v36, %v1718_v59 }
 0x70e   : > { %v1733_v1 = vmul.f32 %v2993_v44, %v1732_v61 }
 0x70f   : > { %v1723_v9 = vsel %vm1722_vm12, %v2991_v36, %v1719_v62 }
 0x710   : > { %v1728_v11 = vsel %vm1725_vm14, %v1727_v0, %v1723_v9  ;;  %v1734_v14 = vadd.f32 %v2993_v44, %v1733_v1 }
 0x711   : > { %v1747_v16 = vmul.f32 %v1728_v11, %v4021_v50 }
 0x712   : > { %v1738_v23 = vsel %vm1737_vm0, %v2993_v44, %v1734_v14 }
 0x713   : > { %v1751_v52 = vmul.f32 %v1747_v16, %v1652_v22  ;;  %v1743_v26 = vsel %vm1740_vm1, %v1742_v17, %v1738_v23 }
 0x714   : > { %v1748_v7 = vmul.f32 %v1743_v26, %v4023_v21 }
 0x715   : > { %v1753_v25 = vpack.c.bf16 %v1751_v52, %v1749_v24 }
 0x716   : > { %v1752_v18 = vmul.f32 %v1748_v7, %v1666_v15 }
 0x717   : > { %1891 = vmatmul.bf16.vlgmr.msra.gmra.mxu2 %v1753_v25 }
 0x718   : > { %v1754_v27 = vpack.c.bf16 %v1752_v18, %v1750_v51 }
 0x71a   : > { %1905 = vmatmul.bf16.vlgmr.msrb.gmra.mxu3 %v1754_v27 }
 0x79a   : > { %v1892_v50 = vpop.f32.mrf.mxu2 }
 0x79d   : > { %v1906_v28 = vpop.f32.mrf.mxu3 }
 0x79e   : > { %v1907_v29 = vadd.f32 %v1906_v28, %v1892_v50 }
 0x7a0   : > { %v1911_v8 = vadd.f32 %v1907_v29, %v3919_v57 }
 0x7a2   : > { %1913 = vst [vmem:[#allocation2] sm:$0xff] %v1911_v8  ;;  %v1894_v49 = vpop.f32.mrf.mxu2 }
 0x7a5   : > { %v1908_v12 = vpop.f32.mrf.mxu3 }
 0x7a6   : > { %v1909_v10 = vadd.f32 %v1908_v12, %v1894_v49  ;;  %1918 = sbr.rel (%p2642_p12) target bundleno = 2252 (0x8cc), region = 108 }
 0x7a8   : > { %v1912_v30 = vadd.f32 %v1909_v10, %v3924_v6 }
 0x7aa   : > { %1914 = vst [vmem:[#allocation2 + $0x8] sm:$0xff] %v1912_v30 }
 0x7ab   : > { %v1920_v21 = vmul.f32 %v1911_v8, %v1911_v8  ;;  %v1921_v31 = vmul.f32 %v1912_v30, %v1912_v30  ;;  %v2772_v32 = vld [vmem:[#allocation16 + $0x38] sm:$0xff]  ;;  %v2771_v33 = vld [vmem:[#allocation16 + $0x30] sm:$0xff]  ;;  %v2770_v34 = vld [vmem:[#allocation16 + $0x28] sm:$0xff] }
 0x7ac   : > { %2022 = vmatpush.bf16.msra.mxu0 %v2772_v32  ;;  %v2769_v57 = vld [vmem:[#allocation16 + $0x20] sm:$0xff]  ;;  %v2768_v35 = vld [vmem:[#allocation16 + $0x18] sm:$0xff]  ;;  %v2767_v36 = vld [vmem:[#allocation16 + $0x10] sm:$0xff] }
 0x7ad   : > { %1922 = vadd.xlane.f32.xlu0 %v1920_v21  ;;  %v2766_v6 = vld [vmem:[#allocation16 + $0x8] sm:$0xff]  ;;  %v2765_v37 = vld [vmem:[#allocation16] sm:$0xff] }
 0x7ae   : > { %v2994_v61 = vld [vmem:[%s4213_s8] ss:$0 sm:$0xff] }
 0x7b0   : > { %2023 = vmatpush.bf16.msra.mxu0 %v2771_v33 }
 0x7b4   : > { %2024 = vmatpush.bf16.msra.mxu0 %v2770_v34 }
 0x7b5   : > { %1924 = vadd.xlane.f32.xlu0 %v1921_v31 }
 0x7b8   : > { %2025 = vmatpush.bf16.msra.mxu0 %v2769_v57 }
 0x7bc   : > { %2026 = vmatpush.bf16.msra.mxu0 %v2768_v35 }
 0x7c0   : > { %2027 = vmatpush.bf16.msra.mxu0 %v2767_v36 }
 0x7c4   : > { %2028 = vmatpush.bf16.msra.mxu0 %v2766_v6 }
 0x7c8   : > { %2029 = vmatpush.bf16.msra.mxu0 %v2765_v37 }
 0x820   : > { %v1923_v38 = vpop.xlane.xlu0 %1922 }
 0x821   : > { %v1926_v39 = vmul.f32 %v1923_v38, %v3813_v13 }
 0x823   : > { %v1928_v40 = vadd.f32 1e-06, %v1926_v39 }
 0x825   : > { %2995 = vrsqrt.f32 %v1928_v40  ;;  %vm1936_vm3 = vweird.f32 %v1928_v40 }
 0x828   : > { %v1925_v41 = vpop.xlane.xlu0 %1924 }
 0x829   : > { %v1927_v42 = vmul.f32 %v1925_v41, %v3813_v13 }
 0x82b   : > { %v2996_v43 = vpop.eup %2995  ;;  %v1929_v44 = vadd.f32 1e-06, %v1927_v42 }
 0x82c   : > { %v1931_v45 = vmul.f32 %v2996_v43, %v1928_v40  ;;  %vm1937_vm2 = vweird.f32 %v2996_v43 }
 0x82d   : > { %2997 = vrsqrt.f32 %v1929_v44  ;;  %vm1938_vm4 = vmor %vm1936_vm3, %vm1937_vm2  ;;  %vm1946_vm6 = vweird.f32 %v1929_v44 }
 0x82e   : > { %v1932_v46 = vmul.f32 %v2996_v43, %v1931_v45 }
 0x830   : > { %v1933_v47 = vmul.f32 0.5, %v1932_v46 }
 0x832   : > { %v1934_v48 = vsub.f32 1.5, %v1933_v47 }
 0x833   : > { %v2998_v53 = vpop.eup %2997 }
 0x834   : > { %v1941_v54 = vmul.f32 %v2998_v53, %v1929_v44  ;;  %v1935_v56 = vmul.f32 %v2996_v43, %v1934_v48  ;;  %vm1947_vm5 = vweird.f32 %v2998_v53 }
 0x835   : > { %vm1948_vm7 = vmor %vm1946_vm6, %vm1947_vm5 }
 0x836   : > { %v1942_v55 = vmul.f32 %v2998_v53, %v1941_v54  ;;  %v1939_v13 = vsel %vm1938_vm4, %v2996_v43, %v1935_v56 }
 0x837   : > { %v1950_v60 = vmul.f32 %v1939_v13, %v1911_v8 }
 0x838   : > { %v1943_v59 = vmul.f32 0.5, %v1942_v55 }
 0x839   : > { %v1955_v63 = vmul.f32 %v2994_v61, %v1950_v60 }
 0x83a   : > { %v1944_v58 = vsub.f32 1.5, %v1943_v59 }
 0x83c   : > { %v1945_v19 = vmul.f32 %v2998_v53, %v1944_v58 }
 0x83e   : > { %v1949_v2 = vsel %vm1948_vm7, %v2998_v53, %v1945_v19 }
 0x83f   : > { %v1951_v62 = vmul.f32 %v1949_v2, %v1912_v30 }
 0x841   : > { %v1956_v0 = vmul.f32 %v2994_v61, %v1951_v62 }
 0x843   : > { %v1957_v1 = vpack.c.bf16 %v1956_v0, %v1955_v63 }
 0x845   : > { %2030 = vmatmul.bf16.vlgmr.msra.gmra.mxu0 %v1957_v1 }
 0x8c2   : > { %v2031_v3 = vpop.f32.mrf.mxu0 }
 0x8c3   : > { %2036 = vst [vmem:[%s3751_s3] sm:$0xff] %v2031_v3 }
 0x8ca   : > { %v2033_v4 = vpop.f32.mrf.mxu0 }
 0x8cb   : > { %2037 = vst [vmem:[%s3751_s3 + $0x8] sm:$0xff] %v2033_v4 }
 0x8cc PF: > { %s4214_s18 = sld [smem:[#allocation29_spill]]  ;;  %s2051_s28 = sshll.u32 %s3751_s3, 4  ;;  %s2052_s28 = int_to_ptr.vmem [resolvable:$true] %s2051_s28 }
 0x8cd   : > { %s4215_s15 = sld [smem:[#allocation51_spill]]  ;;  %s2039_s19 = scalar_lea.sflag [#allocation6], %s3691_s16 }
 0x8d2   : > { %s2773_s14 = sshll.u32 %s4214_s18, 4 }
 0x8d3   : > { %s2050_s0 = scalar_lea.hbm %s4215_s15, %s2773_s14  ;;  %s3259_s9 = scalar_lea.hbm %s4215_s15, 32 }
 0x8d4   : > { %s2053_s22 = sshll.u32 %s2050_s0, 4  ;;  %s2054_s22 = int_to_ptr.hbm [resolvable:$true] %s2053_s22 }
 0x8d5   : > { %s3253_s26 = sshra.s32 %s2054_s22, 4  ;;  %s3254_s26 = int_to_ptr.hbm [resolvable:$true] %s3253_s26 }
 0x8d6   : > { %s3255_s5 = scalar_lea.hbm %s3254_s26, 16  ;;  %p3260_p13 = scmp.lt.s32.totalorder %s3254_s26, %s4215_s15 }
 0x8d7   : > { %p3256_p3 = scmp.ne.s32.totalorder %s3254_s26, %s3255_s5  ;;  %p3261_p0 = scmp.lt.s32.totalorder %s3259_s9, %s3255_s5 }
 0x8d9   : > { %p3257_p7 = pnand %p3256_p3, %p3641_p8  ;;  %p3262_p10 = por %p3261_p0, %p3260_p13 }
 0x8db   : > { %p3258_p11 = pneg %p3257_p7 }
 0x8dd   : > { %p3263_p2 = pnand %p3262_p10, %p3258_p11 }
 0x8df   : > { %3266 = shalt.err (!%p3263_p2)
}
 0x8e0   : > { %s3394_s16 = smov 128   ;;  %s3395_s3 = smov 8  }
 0x8e1   : > { %2799 = dma.vmem_to_hbm [thread:$0]  (%p3641_p8), %s2052_s28, 256, %s2054_s22, %s2039_s19, %s3394_s16, %s3394_s16, %s3395_s3  }
 0x8e2 PF: > { %p2838_p4 = scmp.ge.s32.totalorder %s3377_s13, 2  ;;  %s2068_s27 = sand.u32 1, %s3349_s24  }
 0x8e3   : > { %s2069_s1 = scalar_lea.sflag [#allocation6], %s2068_s27 }
 0x8e4   : > { %p2828_p5 = pnand %p2838_p4, %p3645_p9 }
 0x8e6   : > { %p2829_p6 = pneg %p2828_p5 }
 0x8e8   : > { %3332 = dma.done.wait (%p2829_p6), %s2069_s1, 256  }
 0x8e9   : > { %3334 = vsyncadd (%p2829_p6), %s2069_s1, 4294967040  ;;  %s36_s13 = sadd.s32 1, %s3377_s13   ;;  %s4217_s21 = sld [smem:[#allocation25_spill]] }
 0x8ea   : > { %p33_p1 = scmp.ge.s32.totalorder %s36_s13, 6   ;;  %s4218_s22 = sld [smem:[#allocation26_spill]] }
 0x8eb   : > { %s4219_s23 = sld [smem:[#allocation35_spill]]  ;;  %s4225_s24 = smov %s3353_s25 }
 0x8ec   : > { %s4220_s20 = sld [smem:[#allocation27_spill]]  ;;  %s4227_s27 = smov %s3369_s29 }
 0x8ed   : > { %s4221_s26 = sld [smem:[#allocation38_spill]] }
 0x8ee   : > { %s4222_s28 = sld [smem:[#allocation30_spill]] }
 0x8ef   : > { %s4223_s11 = sld [smem:[#allocation34_spill]] }
 0x8f0   : > { %s4224_s30 = sld [smem:[#allocation36_spill]] }
 0x8f1   :  { %35 = sbr.rel (!%p33_p1) target bundleno = 29 (0x1d), region = 190 }
 0x8f2   : > { %s4226_s25 = smov %s4220_s20 }
 0x8f5   : > { %s4228_s29 = smov %s4223_s11 }
 0x8f6   :  { %2075 = vsyncpa [#allocation5], 1 }
 0x8f7   :  { %2077 = vsyncpa [#allocation5 + $0x1], 1 }
 0x8f8   :  { %2078 = vsyncpa [#allocation8], 1 }
 0x8f9   :  { %2080 = vsyncpa [#allocation8 + $0x1], 1 }
 0x8fa   :  { %2081 = vsyncpa [#allocation11], 1 }
 0x8fb   :  { %2083 = vsyncpa [#allocation11 + $0x1], 1 }
 0x8fc   :  { %2084 = vsyncpa [#allocation14], 1 }
 0x8fd   :  { %2085 = vsyncpa [#allocation17], 1 }
 0x8fe   :  { %2086 = vsyncpa [#allocation6], 1 }
 0x8ff   :  { %2088 = vsyncpa [#allocation6 + $0x1], 1 }

</bundles_post_ra>
